<compile_context>
chip_gen: v6e
topology: v6e:2x2x1
jax: 0.10.0
libtpu: 0.0.40
codegen_flags: <defaults>
</compile_context>

<pallas_src>
import functools
import math

import jax
import jax.numpy as jnp
from jax.experimental import pallas as pl
from jax.experimental.pallas import tpu as pltpu


# ----------------------------------------------------------------------------
# Fused MambaBlock kernel (one batch element per grid step).
# ----------------------------------------------------------------------------
def _mamba_block_kernel(x_ref, w_in_ref, conv_w_ref, w_dbc_ref, a_logT_ref,
                        w_out_ref, w1_ref, w2_ref, bf1_ref, vec_d_ref,
                        vec_di_ref, o_ref, xpad_ref, yscan_ref,
                        *, d_inner, d_state, d_conv):
    eps = 1e-5
    Di, N, Kc = d_inner, d_state, d_conv
    x = x_ref[0]                                   # (L, D) f32
    L = x.shape[0]

    vd = vec_d_ref[...]                            # (5, D):  ln1g ln1b ln2g ln2b bf2
    vdi = vec_di_ref[...]                          # (3, Di): conv_b dt_b D_skip
    ln1g, ln1b = vd[0:1, :], vd[1:2, :]
    ln2g, ln2b = vd[2:3, :], vd[3:4, :]
    bf2 = vd[4:5, :]
    conv_b, dt_b, d_skip = vdi[0:1, :], vdi[1:2, :], vdi[2:3, :]

    def sigmoid(v):
        return 1.0 / (1.0 + jnp.exp(-v))

    def silu(v):
        return v * sigmoid(v)

    def gelu(v):                                   # tanh approximation of nn.GELU()
        c = 0.7978845608028654                     # sqrt(2/pi)
        return 0.5 * v * (1.0 + jnp.tanh(c * (v + 0.044715 * v * v * v)))

    def softplus(v):                               # numerically stable, exp/log only
        return jnp.maximum(v, 0.0) + jnp.log(1.0 + jnp.exp(-jnp.abs(v)))

    def layer_norm(v, g, b):
        mu = jnp.mean(v, axis=-1, keepdims=True)
        var = jnp.mean(jnp.square(v - mu), axis=-1, keepdims=True)
        return (v - mu) * jax.lax.rsqrt(var + eps) * g + b

    # ----------------------- Mamba (SSM) layer -------------------------------
    xz = jnp.dot(x, w_in_ref[...], preferred_element_type=jnp.float32)   # (L, 2Di)
    xc = xz[:, :Di]                                                      # (L, Di)
    zg = xz[:, Di:]                                                      # (L, Di)

    # causal depthwise conv1d (kernel Kc, zero left-padding Kc-1), then SiLU.
    xpad_ref[...] = jnp.zeros((L + Kc - 1, Di), jnp.float32)
    xpad_ref[pl.ds(Kc - 1, L), :] = xc
    cw = conv_w_ref[...]                                                 # (Kc, Di)
    conv = jnp.zeros((L, Di), jnp.float32) + conv_b
    for j in range(Kc):                            # Kc is small & static
        conv = conv + xpad_ref[pl.ds(j, L), :] * cw[j:j + 1, :]
    u = silu(conv)                                                       # (L, Di)

    # fused x_proj / dt_proj:  [dt_pre | B | C] = u @ W_dbc
    dbc = jnp.dot(u, w_dbc_ref[...], preferred_element_type=jnp.float32)  # (L, Di+2N)
    dt = softplus(dbc[:, :Di] + dt_b)                                    # (L, Di)
    b_T = dbc[:, Di:Di + N].T                                            # (N, L)
    c_T = dbc[:, Di + N:Di + 2 * N].T                                    # (N, L)

    a_T = -jnp.exp(a_logT_ref[...])                                      # (N, Di)
    du = dt * u                                                          # (L, Di)

    # selective scan (L small & static -> unrolled; state kept as (N, Di)).
    h = jnp.zeros((N, Di), jnp.float32)
    for t in range(L):
        dA_t = jnp.exp(a_T * dt[t:t + 1, :])                             # (N, Di)
        h = dA_t * h + b_T[:, t:t + 1] * du[t:t + 1, :]                  # (N, Di)
        yscan_ref[pl.ds(t, 1), :] = jnp.sum(h * c_T[:, t:t + 1], axis=0,
                                            keepdims=True)               # (1, Di)
    y = yscan_ref[...]                                                   # (L, Di)
    y = (y + u * d_skip) * silu(zg)
    mamba_out = jnp.dot(y, w_out_ref[...], preferred_element_type=jnp.float32)

    # ----------------------- SubLayerConnect 1 (post-norm) -------------------
    h1 = layer_norm(x + mamba_out, ln1g, ln1b)

    # ----------------------- FFN (GELU after fc1 and fc2) --------------------
    f = gelu(jnp.dot(h1, w1_ref[...], preferred_element_type=jnp.float32)
             + bf1_ref[...])
    f = gelu(jnp.dot(f, w2_ref[...], preferred_element_type=jnp.float32) + bf2)

    # ----------------------- SubLayerConnect 2 -------------------------------
    o_ref[0] = layer_norm(h1 + f, ln2g, ln2b).astype(o_ref.dtype)


def mamba_block_forward(params, x):
    """MambaBlock.forward (eval): LN(x + Mamba(x)) -> LN(y + FFN(y))."""
    B, L, D = x.shape
    Di, N = params["A_log"].shape
    Kc = params["conv_w"].shape[1]
    R = params["W_dt"].shape[0]
    F = params["W1"].shape[1]

    # One-time parameter packing / algebraic fusion (layout-only, outside kernel).
    conv_w = params["conv_w"].T                                          # (Kc, Di)
    w_dbc = jnp.concatenate([params["W_x"][:, :R] @ params["W_dt"],      # fold dt_proj
                             params["W_x"][:, R:]], axis=1)              # (Di, Di+2N)
    a_logT = params["A_log"].T                                           # (N, Di)
    vec_d = jnp.concatenate([params["ln1g"], params["ln1b"],
                             params["ln2g"], params["ln2b"],
                             params["bf2"]], axis=0)                     # (5, D)
    vec_di = jnp.concatenate([params["conv_b"], params["dt_b"],
                              params["D_skip"]], axis=0)                 # (3, Di)

    kernel = functools.partial(_mamba_block_kernel,
                               d_inner=Di, d_state=N, d_conv=Kc)

    def _full2(shape):
        return pl.BlockSpec(shape, lambda b: (0, 0))

    return pl.pallas_call(
        kernel,
        out_shape=jax.ShapeDtypeStruct((B, L, D), jnp.float32),
        grid_spec=pltpu.PrefetchScalarGridSpec(
            num_scalar_prefetch=0,
            grid=(B,),
            in_specs=[
                pl.BlockSpec((1, L, D), lambda b: (b, 0, 0)),   # x
                _full2((D, 2 * Di)),                            # in_proj
                _full2((Kc, Di)),                               # depthwise conv weight
                _full2((Di, Di + 2 * N)),                       # fused x_proj/dt_proj
                _full2((N, Di)),                                # A_log^T
                _full2((Di, D)),                                # out_proj
                _full2((D, F)),                                 # FFN fc1
                _full2((F, D)),                                 # FFN fc2
                _full2((1, F)),                                 # fc1 bias
                _full2((5, D)),                                 # packed D-wide vectors
                _full2((3, Di)),                                # packed Di-wide vectors
            ],
            out_specs=pl.BlockSpec((1, L, D), lambda b: (b, 0, 0)),
            scratch_shapes=[
                pltpu.VMEM((L + Kc - 1, Di), jnp.float32),      # causally padded conv input
                pltpu.VMEM((L, Di), jnp.float32),               # scan output rows
            ],
        ),
        compiler_params=pltpu.CompilerParams(
            dimension_semantics=("parallel",)),
    )(x, params["W_in"], conv_w, w_dbc, a_logT, params["W_out"],
      params["W1"], params["W2"], params["bf1"], vec_d, vec_di)


# ----------------------------------------------------------------------------
# Pure-jnp reference of the same forward (validation only).
# ----------------------------------------------------------------------------
def mamba_block_reference(params, x):
    eps = 1e-5
    sigmoid = lambda v: 1.0 / (1.0 + jnp.exp(-v))
    silu = lambda v: v * sigmoid(v)
    gelu = lambda v: 0.5 * v * (1.0 + jnp.tanh(
        0.7978845608028654 * (v + 0.044715 * v ** 3)))
    softplus = lambda v: jnp.maximum(v, 0.0) + jnp.log(1.0 + jnp.exp(-jnp.abs(v)))

    def ln(v, g, b):
        mu = v.mean(-1, keepdims=True)
        var = ((v - mu) ** 2).mean(-1, keepdims=True)
        return (v - mu) / jnp.sqrt(var + eps) * g[0] + b[0]

    with jax.default_matmul_precision("highest"):
        B, L, D = x.shape
        Di, N = params["A_log"].shape
        Kc = params["conv_w"].shape[1]
        R = params["W_dt"].shape[0]

        xz = x @ params["W_in"]
        xc, zg = xz[..., :Di], xz[..., Di:]
        xpad = jnp.pad(xc, ((0, 0), (Kc - 1, 0), (0, 0)))
        conv = sum(xpad[:, j:j + L, :] * params["conv_w"][:, j] for j in range(Kc))
        conv = conv + params["conv_b"][0]
        u = silu(conv)

        x_dbl = u @ params["W_x"]
        dt = softplus(x_dbl[..., :R] @ params["W_dt"] + params["dt_b"][0])
        Bs, Cs = x_dbl[..., R:R + N], x_dbl[..., R + N:R + 2 * N]
        A = -jnp.exp(params["A_log"])                            # (Di, N)
        dA = jnp.exp(dt[..., None] * A)                          # (B, L, Di, N)
        dBu = (dt * u)[..., None] * Bs[:, :, None, :]            # (B, L, Di, N)

        def scan_one(dA_b, dBu_b, C_b):
            def step(h, inp):
                dA_t, dBu_t, C_t = inp
                h = dA_t * h + dBu_t
                return h, (h * C_t[None, :]).sum(-1)
            _, ys = jax.lax.scan(step, jnp.zeros((Di, N), jnp.float32),
                                 (dA_b, dBu_b, C_b))
            return ys

        y = jax.vmap(scan_one)(dA, dBu, Cs)                      # (B, L, Di)
        y = (y + u * params["D_skip"][0]) * silu(zg)
        m_out = y @ params["W_out"]

        h1 = ln(x + m_out, params["ln1g"], params["ln1b"])
        f = gelu(h1 @ params["W1"] + params["bf1"][0])
        f = gelu(f @ params["W2"] + params["bf2"][0])
        return ln(h1 + f, params["ln2g"], params["ln2b"])


# ----------------------------------------------------------------------------
# Deterministic synthetic parameters (PyTorch layouts: Linear as (in, out)).
# ----------------------------------------------------------------------------
def init_params(key, d_model, exp_factor=4, d_state=16, d_conv=4, expand=2):
    Di = expand * d_model
    R = max(1, math.ceil(d_model / 16))          # dt_rank
    F = exp_factor * d_model
    ks = jax.random.split(key, 8)

    def nrm(k, shape, scale=0.05):
        return scale * jax.random.normal(k, shape, jnp.float32)

    a_init = jnp.tile(jnp.arange(1, d_state + 1, dtype=jnp.float32)[None, :],
                      (Di, 1))                   # S4D-real style init
    return {
        "W_in": nrm(ks[0], (d_model, 2 * Di)),   # in_proj (bias=False)
        "conv_w": nrm(ks[1], (Di, d_conv)),      # depthwise conv1d weight
        "conv_b": jnp.zeros((1, Di), jnp.float32),
        "W_x": nrm(ks[2], (Di, R + 2 * d_state)),  # x_proj (bias=False)
        "W_dt": nrm(ks[3], (R, Di)),             # dt_proj
        "dt_b": nrm(ks[4], (1, Di)),
        "A_log": jnp.log(a_init),                # (Di, N)
        "D_skip": jnp.ones((1, Di), jnp.float32),
        "W_out": nrm(ks[5], (Di, d_model)),      # out_proj (bias=False)
        "ln1g": jnp.ones((1, d_model), jnp.float32),
        "ln1b": jnp.zeros((1, d_model), jnp.float32),
        "W1": nrm(ks[6], (d_model, F)),
        "bf1": jnp.zeros((1, F), jnp.float32),
        "W2": nrm(ks[7], (F, d_model)),
        "bf2": jnp.zeros((1, d_model), jnp.float32),
        "ln2g": jnp.ones((1, d_model), jnp.float32),
        "ln2b": jnp.zeros((1, d_model), jnp.float32),
    }


if __name__ == "__main__":
    # MambaBlock(input_dim=32, exp_factor=4, dropout_ratio=0.1) in eval mode,
    # applied to (batch=2, seq=8, hidden=32).
    B, L, D_MODEL, EXP_FACTOR = 2, 8, 32, 4

    key = jax.random.PRNGKey(0)
    k_param, k_in = jax.random.split(key)
    params = init_params(k_param, D_MODEL, exp_factor=EXP_FACTOR)
    x = jax.random.normal(k_in, (B, L, D_MODEL), jnp.float32)

    out = mamba_block_forward(params, x)
    jax.block_until_ready(out)
    assert out.shape == (B, L, D_MODEL)

    ref = mamba_block_reference(params, x)
    err = float(jnp.max(jnp.abs(out - ref)))
    assert err < 5e-3, f"kernel/reference mismatch: max abs err {err}"
    print("KERNEL_OK")
</pallas_src>

<mosaic_0001>
module attributes {stable_mosaic.version = 11 : i64} {
  func.func @_mamba_block_kernel(%arg0: i32, %arg1: memref<1x8x32xf32, #tpu.memory_space<vmem>>, %arg2: memref<32x128xf32, #tpu.memory_space<vmem>>, %arg3: memref<4x64xf32, #tpu.memory_space<vmem>>, %arg4: memref<64x96xf32, #tpu.memory_space<vmem>>, %arg5: memref<16x64xf32, #tpu.memory_space<vmem>>, %arg6: memref<64x32xf32, #tpu.memory_space<vmem>>, %arg7: memref<32x128xf32, #tpu.memory_space<vmem>>, %arg8: memref<128x32xf32, #tpu.memory_space<vmem>>, %arg9: memref<1x128xf32, #tpu.memory_space<vmem>>, %arg10: memref<5x32xf32, #tpu.memory_space<vmem>>, %arg11: memref<3x64xf32, #tpu.memory_space<vmem>>, %arg12: memref<1x8x32xf32, #tpu.memory_space<vmem>>, %arg13: memref<11x64xf32, #tpu.memory_space<vmem>>, %arg14: memref<8x64xf32, #tpu.memory_space<vmem>>) attributes {dimension_semantics = [#tpu.dimension_semantics<parallel>], iteration_bounds = array<i64: 2>, scalar_prefetch = 0 : i64, scratch_operands = 2 : i64, tpu.core_type = #tpu.core_type<tc>, window_params = [{transform_indices = @transform_0, window_bounds = array<i64: 1, 8, 32>}, {pipeline_mode = #tpu.pipeline_mode<synchronous>, transform_indices = @transform_1, window_bounds = array<i64: 32, 128>}, {pipeline_mode = #tpu.pipeline_mode<synchronous>, transform_indices = @transform_2, window_bounds = array<i64: 4, 64>}, {pipeline_mode = #tpu.pipeline_mode<synchronous>, transform_indices = @transform_3, window_bounds = array<i64: 64, 96>}, {pipeline_mode = #tpu.pipeline_mode<synchronous>, transform_indices = @transform_4, window_bounds = array<i64: 16, 64>}, {pipeline_mode = #tpu.pipeline_mode<synchronous>, transform_indices = @transform_5, window_bounds = array<i64: 64, 32>}, {pipeline_mode = #tpu.pipeline_mode<synchronous>, transform_indices = @transform_6, window_bounds = array<i64: 32, 128>}, {pipeline_mode = #tpu.pipeline_mode<synchronous>, transform_indices = @transform_7, window_bounds = array<i64: 128, 32>}, {pipeline_mode = #tpu.pipeline_mode<synchronous>, transform_indices = @transform_8, window_bounds = array<i64: 1, 128>}, {pipeline_mode = #tpu.pipeline_mode<synchronous>, transform_indices = @transform_9, window_bounds = array<i64: 5, 32>}, {pipeline_mode = #tpu.pipeline_mode<synchronous>, transform_indices = @transform_10, window_bounds = array<i64: 3, 64>}, {transform_indices = @transform_11, window_bounds = array<i64: 1, 8, 32>}]} {
    %c0 = arith.constant 0 : index
    %c0_0 = arith.constant 0 : index
    %c0_1 = arith.constant 0 : index
    %0 = vector.load %arg1[%c0, %c0_0, %c0_1] : memref<1x8x32xf32, #tpu.memory_space<vmem>>, vector<1x8x32xf32>
    %1 = vector.shape_cast %0 : vector<1x8x32xf32> to vector<8x32xf32>
    %c0_2 = arith.constant 0 : index
    %c0_3 = arith.constant 0 : index
    %2 = vector.load %arg10[%c0_2, %c0_3] : memref<5x32xf32, #tpu.memory_space<vmem>>, vector<5x32xf32>
    %c0_4 = arith.constant 0 : index
    %c0_5 = arith.constant 0 : index
    %3 = vector.load %arg11[%c0_4, %c0_5] : memref<3x64xf32, #tpu.memory_space<vmem>>, vector<3x64xf32>
    %4 = vector.extract_strided_slice %2 {offsets = [0, 0], sizes = [1, 32], strides = [1, 1]} : vector<5x32xf32> to vector<1x32xf32>
    %5 = vector.extract_strided_slice %2 {offsets = [1, 0], sizes = [1, 32], strides = [1, 1]} : vector<5x32xf32> to vector<1x32xf32>
    %6 = vector.extract_strided_slice %2 {offsets = [2, 0], sizes = [1, 32], strides = [1, 1]} : vector<5x32xf32> to vector<1x32xf32>
    %7 = vector.extract_strided_slice %2 {offsets = [3, 0], sizes = [1, 32], strides = [1, 1]} : vector<5x32xf32> to vector<1x32xf32>
    %8 = vector.extract_strided_slice %2 {offsets = [4, 0], sizes = [1, 32], strides = [1, 1]} : vector<5x32xf32> to vector<1x32xf32>
    %9 = vector.extract_strided_slice %3 {offsets = [0, 0], sizes = [1, 64], strides = [1, 1]} : vector<3x64xf32> to vector<1x64xf32>
    %10 = vector.extract_strided_slice %3 {offsets = [1, 0], sizes = [1, 64], strides = [1, 1]} : vector<3x64xf32> to vector<1x64xf32>
    %11 = vector.extract_strided_slice %3 {offsets = [2, 0], sizes = [1, 64], strides = [1, 1]} : vector<3x64xf32> to vector<1x64xf32>
    %c0_6 = arith.constant 0 : index
    %c0_7 = arith.constant 0 : index
    %12 = vector.load %arg2[%c0_6, %c0_7] : memref<32x128xf32, #tpu.memory_space<vmem>>, vector<32x128xf32>
    %cst = arith.constant dense<0.000000e+00> : vector<8x128xf32>
    %13 = tpu.matmul %1, %12, %cst {dimension_numbers = #tpu.dot_dimension_numbers<[1], [0], [0], [1], [0, 0, 1, 1], [], []>} : vector<8x32xf32>, vector<32x128xf32>, vector<8x128xf32> -> vector<8x128xf32>
    %14 = vector.extract_strided_slice %13 {offsets = [0, 0], sizes = [8, 64], strides = [1, 1]} : vector<8x128xf32> to vector<8x64xf32>
    %15 = vector.extract_strided_slice %13 {offsets = [0, 64], sizes = [8, 64], strides = [1, 1]} : vector<8x128xf32> to vector<8x64xf32>
    %cst_8 = arith.constant 0.000000e+00 : f32
    %16 = vector.broadcast %cst_8 : f32 to vector<11x64xf32>
    %c0_9 = arith.constant 0 : index
    %c0_10 = arith.constant 0 : index
    %17 = vector.load %arg13[%c0_9, %c0_10] : memref<11x64xf32, #tpu.memory_space<vmem>>, vector<11x64xf32>
    tpu.vector_store %arg13[%c0_9, %c0_10], %16 {strides = array<i32>} : memref<11x64xf32, #tpu.memory_space<vmem>>, vector<11x64xf32>,
    %c3 = arith.constant 3 : index
    %c0_11 = arith.constant 0 : index
    %18 = vector.load %arg13[%c3, %c0_11] : memref<11x64xf32, #tpu.memory_space<vmem>>, vector<8x64xf32>
    tpu.vector_store %arg13[%c3, %c0_11], %14 {strides = array<i32>} : memref<11x64xf32, #tpu.memory_space<vmem>>, vector<8x64xf32>,
    %c0_12 = arith.constant 0 : index
    %c0_13 = arith.constant 0 : index
    %19 = vector.load %arg3[%c0_12, %c0_13] : memref<4x64xf32, #tpu.memory_space<vmem>>, vector<4x64xf32>
    %cst_14 = arith.constant 0.000000e+00 : f32
    %20 = vector.broadcast %cst_14 : f32 to vector<8x64xf32>
    %21 = vector.broadcast %9 : vector<1x64xf32> to vector<8x64xf32>
    %22 = arith.addf %20, %21 : vector<8x64xf32>
    %c0_15 = arith.constant 0 : index
    %c0_16 = arith.constant 0 : index
    %23 = vector.load %arg13[%c0_15, %c0_16] : memref<11x64xf32, #tpu.memory_space<vmem>>, vector<8x64xf32>
    %24 = vector.extract_strided_slice %19 {offsets = [0, 0], sizes = [1, 64], strides = [1, 1]} : vector<4x64xf32> to vector<1x64xf32>
    %25 = vector.broadcast %24 : vector<1x64xf32> to vector<8x64xf32>
    %26 = arith.mulf %23, %25 : vector<8x64xf32>
    %27 = arith.addf %22, %26 : vector<8x64xf32>
    %c1 = arith.constant 1 : index
    %c0_17 = arith.constant 0 : index
    %28 = vector.load %arg13[%c1, %c0_17] : memref<11x64xf32, #tpu.memory_space<vmem>>, vector<8x64xf32>
    %29 = vector.extract_strided_slice %19 {offsets = [1, 0], sizes = [1, 64], strides = [1, 1]} : vector<4x64xf32> to vector<1x64xf32>
    %30 = vector.broadcast %29 : vector<1x64xf32> to vector<8x64xf32>
    %31 = arith.mulf %28, %30 : vector<8x64xf32>
    %32 = arith.addf %27, %31 : vector<8x64xf32>
    %c2 = arith.constant 2 : index
    %c0_18 = arith.constant 0 : index
    %33 = vector.load %arg13[%c2, %c0_18] : memref<11x64xf32, #tpu.memory_space<vmem>>, vector<8x64xf32>
    %34 = vector.extract_strided_slice %19 {offsets = [2, 0], sizes = [1, 64], strides = [1, 1]} : vector<4x64xf32> to vector<1x64xf32>
    %35 = vector.broadcast %34 : vector<1x64xf32> to vector<8x64xf32>
    %36 = arith.mulf %33, %35 : vector<8x64xf32>
    %37 = arith.addf %32, %36 : vector<8x64xf32>
    %c3_19 = arith.constant 3 : index
    %c0_20 = arith.constant 0 : index
    %38 = vector.load %arg13[%c3_19, %c0_20] : memref<11x64xf32, #tpu.memory_space<vmem>>, vector<8x64xf32>
    %39 = vector.extract_strided_slice %19 {offsets = [3, 0], sizes = [1, 64], strides = [1, 1]} : vector<4x64xf32> to vector<1x64xf32>
    %40 = vector.broadcast %39 : vector<1x64xf32> to vector<8x64xf32>
    %41 = arith.mulf %38, %40 : vector<8x64xf32>
    %42 = arith.addf %37, %41 : vector<8x64xf32>
    %cst_21 = arith.constant 0.000000e+00 : f32
    %43 = vector.broadcast %cst_21 : f32 to vector<8x64xf32>
    %44 = arith.subf %43, %42 : vector<8x64xf32>
    %45 = math.exp %44 : vector<8x64xf32>
    %cst_22 = arith.constant 1.000000e+00 : f32
    %46 = vector.broadcast %cst_22 : f32 to vector<8x64xf32>
    %47 = arith.addf %46, %45 : vector<8x64xf32>
    %cst_23 = arith.constant 1.000000e+00 : f32
    %48 = vector.broadcast %cst_23 : f32 to vector<8x64xf32>
    %49 = arith.divf %48, %47 : vector<8x64xf32>
    %50 = arith.mulf %42, %49 : vector<8x64xf32>
    %c0_24 = arith.constant 0 : index
    %c0_25 = arith.constant 0 : index
    %51 = vector.load %arg4[%c0_24, %c0_25] : memref<64x96xf32, #tpu.memory_space<vmem>>, vector<64x96xf32>
    %cst_26 = arith.constant dense<0.000000e+00> : vector<8x96xf32>
    %52 = tpu.matmul %50, %51, %cst_26 {dimension_numbers = #tpu.dot_dimension_numbers<[1], [0], [0], [1], [0, 0, 1, 1], [], []>} : vector<8x64xf32>, vector<64x96xf32>, vector<8x96xf32> -> vector<8x96xf32>
    %53 = vector.extract_strided_slice %52 {offsets = [0, 0], sizes = [8, 64], strides = [1, 1]} : vector<8x96xf32> to vector<8x64xf32>
    %54 = vector.broadcast %10 : vector<1x64xf32> to vector<8x64xf32>
    %55 = arith.addf %53, %54 : vector<8x64xf32>
    %cst_27 = arith.constant 0.000000e+00 : f32
    %56 = vector.broadcast %cst_27 : f32 to vector<8x64xf32>
    %57 = arith.maximumf %55, %56 : vector<8x64xf32>
    %58 = math.absf %55 : vector<8x64xf32>
    %cst_28 = arith.constant 0.000000e+00 : f32
    %59 = vector.broadcast %cst_28 : f32 to vector<8x64xf32>
    %60 = arith.subf %59, %58 : vector<8x64xf32>
    %61 = math.exp %60 : vector<8x64xf32>
    %cst_29 = arith.constant 1.000000e+00 : f32
    %62 = vector.broadcast %cst_29 : f32 to vector<8x64xf32>
    %63 = arith.addf %62, %61 : vector<8x64xf32>
    %64 = math.log %63 : vector<8x64xf32>
    %65 = arith.addf %57, %64 : vector<8x64xf32>
    %66 = vector.extract_strided_slice %52 {offsets = [0, 64], sizes = [8, 16], strides = [1, 1]} : vector<8x96xf32> to vector<8x16xf32>
    %67 = tpu.transpose %66, [1, 0] : vector<8x16xf32> -> vector<16x8xf32>
    %68 = vector.extract_strided_slice %52 {offsets = [0, 80], sizes = [8, 16], strides = [1, 1]} : vector<8x96xf32> to vector<8x16xf32>
    %69 = tpu.transpose %68, [1, 0] : vector<8x16xf32> -> vector<16x8xf32>
    %c0_30 = arith.constant 0 : index
    %c0_31 = arith.constant 0 : index
    %70 = vector.load %arg5[%c0_30, %c0_31] : memref<16x64xf32, #tpu.memory_space<vmem>>, vector<16x64xf32>
    %71 = math.exp %70 : vector<16x64xf32>
    %cst_32 = arith.constant 0.000000e+00 : f32
    %72 = vector.broadcast %cst_32 : f32 to vector<16x64xf32>
    %73 = arith.subf %72, %71 : vector<16x64xf32>
    %74 = arith.mulf %65, %50 : vector<8x64xf32>
    %cst_33 = arith.constant 0.000000e+00 : f32
    %75 = vector.broadcast %cst_33 : f32 to vector<16x64xf32>
    %76 = vector.extract_strided_slice %65 {offsets = [0, 0], sizes = [1, 64], strides = [1, 1]} : vector<8x64xf32> to vector<1x64xf32>
    %77 = vector.broadcast %76 : vector<1x64xf32> to vector<16x64xf32>
    %78 = arith.mulf %73, %77 : vector<16x64xf32>
    %79 = math.exp %78 : vector<16x64xf32>
    %80 = arith.mulf %79, %75 : vector<16x64xf32>
    %81 = vector.extract_strided_slice %67 {offsets = [0, 0], sizes = [16, 1], strides = [1, 1]} : vector<16x8xf32> to vector<16x1xf32>
    %82 = vector.extract_strided_slice %74 {offsets = [0, 0], sizes = [1, 64], strides = [1, 1]} : vector<8x64xf32> to vector<1x64xf32>
    %83 = vector.broadcast %81 : vector<16x1xf32> to vector<16x64xf32>
    %84 = vector.broadcast %82 : vector<1x64xf32> to vector<16x64xf32>
    %85 = arith.mulf %83, %84 : vector<16x64xf32>
    %86 = arith.addf %80, %85 : vector<16x64xf32>
    %87 = vector.extract_strided_slice %69 {offsets = [0, 0], sizes = [16, 1], strides = [1, 1]} : vector<16x8xf32> to vector<16x1xf32>
    %88 = vector.broadcast %87 : vector<16x1xf32> to vector<16x64xf32>
    %89 = arith.mulf %86, %88 : vector<16x64xf32>
    %cst_34 = arith.constant dense<0.000000e+00> : vector<64xf32>
    %90 = vector.multi_reduction <add>, %89, %cst_34 [0] : vector<16x64xf32> to vector<64xf32>
    %91 = vector.shape_cast %90 : vector<64xf32> to vector<1x64xf32>
    %c0_35 = arith.constant 0 : index
    %c0_36 = arith.constant 0 : index
    %92 = vector.load %arg14[%c0_35, %c0_36] : memref<8x64xf32, #tpu.memory_space<vmem>>, vector<1x64xf32>
    tpu.vector_store %arg14[%c0_35, %c0_36], %91 {strides = array<i32>} : memref<8x64xf32, #tpu.memory_space<vmem>>, vector<1x64xf32>,
    %93 = vector.extract_strided_slice %65 {offsets = [1, 0], sizes = [1, 64], strides = [1, 1]} : vector<8x64xf32> to vector<1x64xf32>
    %94 = vector.broadcast %93 : vector<1x64xf32> to vector<16x64xf32>
    %95 = arith.mulf %73, %94 : vector<16x64xf32>
    %96 = math.exp %95 : vector<16x64xf32>
    %97 = arith.mulf %96, %86 : vector<16x64xf32>
    %98 = vector.extract_strided_slice %67 {offsets = [0, 1], sizes = [16, 1], strides = [1, 1]} : vector<16x8xf32> to vector<16x1xf32>
    %99 = vector.extract_strided_slice %74 {offsets = [1, 0], sizes = [1, 64], strides = [1, 1]} : vector<8x64xf32> to vector<1x64xf32>
    %100 = vector.broadcast %98 : vector<16x1xf32> to vector<16x64xf32>
    %101 = vector.broadcast %99 : vector<1x64xf32> to vector<16x64xf32>
    %102 = arith.mulf %100, %101 : vector<16x64xf32>
    %103 = arith.addf %97, %102 : vector<16x64xf32>
    %104 = vector.extract_strided_slice %69 {offsets = [0, 1], sizes = [16, 1], strides = [1, 1]} : vector<16x8xf32> to vector<16x1xf32>
    %105 = vector.broadcast %104 : vector<16x1xf32> to vector<16x64xf32>
    %106 = arith.mulf %103, %105 : vector<16x64xf32>
    %cst_37 = arith.constant dense<0.000000e+00> : vector<64xf32>
    %107 = vector.multi_reduction <add>, %106, %cst_37 [0] : vector<16x64xf32> to vector<64xf32>
    %108 = vector.shape_cast %107 : vector<64xf32> to vector<1x64xf32>
    %c1_38 = arith.constant 1 : index
    %c0_39 = arith.constant 0 : index
    %109 = vector.load %arg14[%c1_38, %c0_39] : memref<8x64xf32, #tpu.memory_space<vmem>>, vector<1x64xf32>
    tpu.vector_store %arg14[%c1_38, %c0_39], %108 {strides = array<i32>} : memref<8x64xf32, #tpu.memory_space<vmem>>, vector<1x64xf32>,
    %110 = vector.extract_strided_slice %65 {offsets = [2, 0], sizes = [1, 64], strides = [1, 1]} : vector<8x64xf32> to vector<1x64xf32>
    %111 = vector.broadcast %110 : vector<1x64xf32> to vector<16x64xf32>
    %112 = arith.mulf %73, %111 : vector<16x64xf32>
    %113 = math.exp %112 : vector<16x64xf32>
    %114 = arith.mulf %113, %103 : vector<16x64xf32>
    %115 = vector.extract_strided_slice %67 {offsets = [0, 2], sizes = [16, 1], strides = [1, 1]} : vector<16x8xf32> to vector<16x1xf32>
    %116 = vector.extract_strided_slice %74 {offsets = [2, 0], sizes = [1, 64], strides = [1, 1]} : vector<8x64xf32> to vector<1x64xf32>
    %117 = vector.broadcast %115 : vector<16x1xf32> to vector<16x64xf32>
    %118 = vector.broadcast %116 : vector<1x64xf32> to vector<16x64xf32>
    %119 = arith.mulf %117, %118 : vector<16x64xf32>
    %120 = arith.addf %114, %119 : vector<16x64xf32>
    %121 = vector.extract_strided_slice %69 {offsets = [0, 2], sizes = [16, 1], strides = [1, 1]} : vector<16x8xf32> to vector<16x1xf32>
    %122 = vector.broadcast %121 : vector<16x1xf32> to vector<16x64xf32>
    %123 = arith.mulf %120, %122 : vector<16x64xf32>
    %cst_40 = arith.constant dense<0.000000e+00> : vector<64xf32>
    %124 = vector.multi_reduction <add>, %123, %cst_40 [0] : vector<16x64xf32> to vector<64xf32>
    %125 = vector.shape_cast %124 : vector<64xf32> to vector<1x64xf32>
    %c2_41 = arith.constant 2 : index
    %c0_42 = arith.constant 0 : index
    %126 = vector.load %arg14[%c2_41, %c0_42] : memref<8x64xf32, #tpu.memory_space<vmem>>, vector<1x64xf32>
    tpu.vector_store %arg14[%c2_41, %c0_42], %125 {strides = array<i32>} : memref<8x64xf32, #tpu.memory_space<vmem>>, vector<1x64xf32>,
    %127 = vector.extract_strided_slice %65 {offsets = [3, 0], sizes = [1, 64], strides = [1, 1]} : vector<8x64xf32> to vector<1x64xf32>
    %128 = vector.broadcast %127 : vector<1x64xf32> to vector<16x64xf32>
    %129 = arith.mulf %73, %128 : vector<16x64xf32>
    %130 = math.exp %129 : vector<16x64xf32>
    %131 = arith.mulf %130, %120 : vector<16x64xf32>
    %132 = vector.extract_strided_slice %67 {offsets = [0, 3], sizes = [16, 1], strides = [1, 1]} : vector<16x8xf32> to vector<16x1xf32>
    %133 = vector.extract_strided_slice %74 {offsets = [3, 0], sizes = [1, 64], strides = [1, 1]} : vector<8x64xf32> to vector<1x64xf32>
    %134 = vector.broadcast %132 : vector<16x1xf32> to vector<16x64xf32>
    %135 = vector.broadcast %133 : vector<1x64xf32> to vector<16x64xf32>
    %136 = arith.mulf %134, %135 : vector<16x64xf32>
    %137 = arith.addf %131, %136 : vector<16x64xf32>
    %138 = vector.extract_strided_slice %69 {offsets = [0, 3], sizes = [16, 1], strides = [1, 1]} : vector<16x8xf32> to vector<16x1xf32>
    %139 = vector.broadcast %138 : vector<16x1xf32> to vector<16x64xf32>
    %140 = arith.mulf %137, %139 : vector<16x64xf32>
    %cst_43 = arith.constant dense<0.000000e+00> : vector<64xf32>
    %141 = vector.multi_reduction <add>, %140, %cst_43 [0] : vector<16x64xf32> to vector<64xf32>
    %142 = vector.shape_cast %141 : vector<64xf32> to vector<1x64xf32>
    %c3_44 = arith.constant 3 : index
    %c0_45 = arith.constant 0 : index
    %143 = vector.load %arg14[%c3_44, %c0_45] : memref<8x64xf32, #tpu.memory_space<vmem>>, vector<1x64xf32>
    tpu.vector_store %arg14[%c3_44, %c0_45], %142 {strides = array<i32>} : memref<8x64xf32, #tpu.memory_space<vmem>>, vector<1x64xf32>,
    %144 = vector.extract_strided_slice %65 {offsets = [4, 0], sizes = [1, 64], strides = [1, 1]} : vector<8x64xf32> to vector<1x64xf32>
    %145 = vector.broadcast %144 : vector<1x64xf32> to vector<16x64xf32>
    %146 = arith.mulf %73, %145 : vector<16x64xf32>
    %147 = math.exp %146 : vector<16x64xf32>
    %148 = arith.mulf %147, %137 : vector<16x64xf32>
    %149 = vector.extract_strided_slice %67 {offsets = [0, 4], sizes = [16, 1], strides = [1, 1]} : vector<16x8xf32> to vector<16x1xf32>
    %150 = vector.extract_strided_slice %74 {offsets = [4, 0], sizes = [1, 64], strides = [1, 1]} : vector<8x64xf32> to vector<1x64xf32>
    %151 = vector.broadcast %149 : vector<16x1xf32> to vector<16x64xf32>
    %152 = vector.broadcast %150 : vector<1x64xf32> to vector<16x64xf32>
    %153 = arith.mulf %151, %152 : vector<16x64xf32>
    %154 = arith.addf %148, %153 : vector<16x64xf32>
    %155 = vector.extract_strided_slice %69 {offsets = [0, 4], sizes = [16, 1], strides = [1, 1]} : vector<16x8xf32> to vector<16x1xf32>
    %156 = vector.broadcast %155 : vector<16x1xf32> to vector<16x64xf32>
    %157 = arith.mulf %154, %156 : vector<16x64xf32>
    %cst_46 = arith.constant dense<0.000000e+00> : vector<64xf32>
    %158 = vector.multi_reduction <add>, %157, %cst_46 [0] : vector<16x64xf32> to vector<64xf32>
    %159 = vector.shape_cast %158 : vector<64xf32> to vector<1x64xf32>
    %c4 = arith.constant 4 : index
    %c0_47 = arith.constant 0 : index
    %160 = vector.load %arg14[%c4, %c0_47] : memref<8x64xf32, #tpu.memory_space<vmem>>, vector<1x64xf32>
    tpu.vector_store %arg14[%c4, %c0_47], %159 {strides = array<i32>} : memref<8x64xf32, #tpu.memory_space<vmem>>, vector<1x64xf32>,
    %161 = vector.extract_strided_slice %65 {offsets = [5, 0], sizes = [1, 64], strides = [1, 1]} : vector<8x64xf32> to vector<1x64xf32>
    %162 = vector.broadcast %161 : vector<1x64xf32> to vector<16x64xf32>
    %163 = arith.mulf %73, %162 : vector<16x64xf32>
    %164 = math.exp %163 : vector<16x64xf32>
    %165 = arith.mulf %164, %154 : vector<16x64xf32>
    %166 = vector.extract_strided_slice %67 {offsets = [0, 5], sizes = [16, 1], strides = [1, 1]} : vector<16x8xf32> to vector<16x1xf32>
    %167 = vector.extract_strided_slice %74 {offsets = [5, 0], sizes = [1, 64], strides = [1, 1]} : vector<8x64xf32> to vector<1x64xf32>
    %168 = vector.broadcast %166 : vector<16x1xf32> to vector<16x64xf32>
    %169 = vector.broadcast %167 : vector<1x64xf32> to vector<16x64xf32>
    %170 = arith.mulf %168, %169 : vector<16x64xf32>
    %171 = arith.addf %165, %170 : vector<16x64xf32>
    %172 = vector.extract_strided_slice %69 {offsets = [0, 5], sizes = [16, 1], strides = [1, 1]} : vector<16x8xf32> to vector<16x1xf32>
    %173 = vector.broadcast %172 : vector<16x1xf32> to vector<16x64xf32>
    %174 = arith.mulf %171, %173 : vector<16x64xf32>
    %cst_48 = arith.constant dense<0.000000e+00> : vector<64xf32>
    %175 = vector.multi_reduction <add>, %174, %cst_48 [0] : vector<16x64xf32> to vector<64xf32>
    %176 = vector.shape_cast %175 : vector<64xf32> to vector<1x64xf32>
    %c5 = arith.constant 5 : index
    %c0_49 = arith.constant 0 : index
    %177 = vector.load %arg14[%c5, %c0_49] : memref<8x64xf32, #tpu.memory_space<vmem>>, vector<1x64xf32>
    tpu.vector_store %arg14[%c5, %c0_49], %176 {strides = array<i32>} : memref<8x64xf32, #tpu.memory_space<vmem>>, vector<1x64xf32>,
    %178 = vector.extract_strided_slice %65 {offsets = [6, 0], sizes = [1, 64], strides = [1, 1]} : vector<8x64xf32> to vector<1x64xf32>
    %179 = vector.broadcast %178 : vector<1x64xf32> to vector<16x64xf32>
    %180 = arith.mulf %73, %179 : vector<16x64xf32>
    %181 = math.exp %180 : vector<16x64xf32>
    %182 = arith.mulf %181, %171 : vector<16x64xf32>
    %183 = vector.extract_strided_slice %67 {offsets = [0, 6], sizes = [16, 1], strides = [1, 1]} : vector<16x8xf32> to vector<16x1xf32>
    %184 = vector.extract_strided_slice %74 {offsets = [6, 0], sizes = [1, 64], strides = [1, 1]} : vector<8x64xf32> to vector<1x64xf32>
    %185 = vector.broadcast %183 : vector<16x1xf32> to vector<16x64xf32>
    %186 = vector.broadcast %184 : vector<1x64xf32> to vector<16x64xf32>
    %187 = arith.mulf %185, %186 : vector<16x64xf32>
    %188 = arith.addf %182, %187 : vector<16x64xf32>
    %189 = vector.extract_strided_slice %69 {offsets = [0, 6], sizes = [16, 1], strides = [1, 1]} : vector<16x8xf32> to vector<16x1xf32>
    %190 = vector.broadcast %189 : vector<16x1xf32> to vector<16x64xf32>
    %191 = arith.mulf %188, %190 : vector<16x64xf32>
    %cst_50 = arith.constant dense<0.000000e+00> : vector<64xf32>
    %192 = vector.multi_reduction <add>, %191, %cst_50 [0] : vector<16x64xf32> to vector<64xf32>
    %193 = vector.shape_cast %192 : vector<64xf32> to vector<1x64xf32>
    %c6 = arith.constant 6 : index
    %c0_51 = arith.constant 0 : index
    %194 = vector.load %arg14[%c6, %c0_51] : memref<8x64xf32, #tpu.memory_space<vmem>>, vector<1x64xf32>
    tpu.vector_store %arg14[%c6, %c0_51], %193 {strides = array<i32>} : memref<8x64xf32, #tpu.memory_space<vmem>>, vector<1x64xf32>,
    %195 = vector.extract_strided_slice %65 {offsets = [7, 0], sizes = [1, 64], strides = [1, 1]} : vector<8x64xf32> to vector<1x64xf32>
    %196 = vector.broadcast %195 : vector<1x64xf32> to vector<16x64xf32>
    %197 = arith.mulf %73, %196 : vector<16x64xf32>
    %198 = math.exp %197 : vector<16x64xf32>
    %199 = arith.mulf %198, %188 : vector<16x64xf32>
    %200 = vector.extract_strided_slice %67 {offsets = [0, 7], sizes = [16, 1], strides = [1, 1]} : vector<16x8xf32> to vector<16x1xf32>
    %201 = vector.extract_strided_slice %74 {offsets = [7, 0], sizes = [1, 64], strides = [1, 1]} : vector<8x64xf32> to vector<1x64xf32>
    %202 = vector.broadcast %200 : vector<16x1xf32> to vector<16x64xf32>
    %203 = vector.broadcast %201 : vector<1x64xf32> to vector<16x64xf32>
    %204 = arith.mulf %202, %203 : vector<16x64xf32>
    %205 = arith.addf %199, %204 : vector<16x64xf32>
    %206 = vector.extract_strided_slice %69 {offsets = [0, 7], sizes = [16, 1], strides = [1, 1]} : vector<16x8xf32> to vector<16x1xf32>
    %207 = vector.broadcast %206 : vector<16x1xf32> to vector<16x64xf32>
    %208 = arith.mulf %205, %207 : vector<16x64xf32>
    %cst_52 = arith.constant dense<0.000000e+00> : vector<64xf32>
    %209 = vector.multi_reduction <add>, %208, %cst_52 [0] : vector<16x64xf32> to vector<64xf32>
    %210 = vector.shape_cast %209 : vector<64xf32> to vector<1x64xf32>
    %c7 = arith.constant 7 : index
    %c0_53 = arith.constant 0 : index
    %211 = vector.load %arg14[%c7, %c0_53] : memref<8x64xf32, #tpu.memory_space<vmem>>, vector<1x64xf32>
    tpu.vector_store %arg14[%c7, %c0_53], %210 {strides = array<i32>} : memref<8x64xf32, #tpu.memory_space<vmem>>, vector<1x64xf32>,
    %c0_54 = arith.constant 0 : index
    %c0_55 = arith.constant 0 : index
    %212 = vector.load %arg14[%c0_54, %c0_55] : memref<8x64xf32, #tpu.memory_space<vmem>>, vector<8x64xf32>
    %213 = vector.broadcast %11 : vector<1x64xf32> to vector<8x64xf32>
    %214 = arith.mulf %50, %213 : vector<8x64xf32>
    %215 = arith.addf %212, %214 : vector<8x64xf32>
    %cst_56 = arith.constant 0.000000e+00 : f32
    %216 = vector.broadcast %cst_56 : f32 to vector<8x64xf32>
    %217 = arith.subf %216, %15 : vector<8x64xf32>
    %218 = math.exp %217 : vector<8x64xf32>
    %cst_57 = arith.constant 1.000000e+00 : f32
    %219 = vector.broadcast %cst_57 : f32 to vector<8x64xf32>
    %220 = arith.addf %219, %218 : vector<8x64xf32>
    %cst_58 = arith.constant 1.000000e+00 : f32
    %221 = vector.broadcast %cst_58 : f32 to vector<8x64xf32>
    %222 = arith.divf %221, %220 : vector<8x64xf32>
    %223 = arith.mulf %15, %222 : vector<8x64xf32>
    %224 = arith.mulf %215, %223 : vector<8x64xf32>
    %c0_59 = arith.constant 0 : index
    %c0_60 = arith.constant 0 : index
    %225 = vector.load %arg6[%c0_59, %c0_60] : memref<64x32xf32, #tpu.memory_space<vmem>>, vector<64x32xf32>
    %cst_61 = arith.constant dense<0.000000e+00> : vector<8x32xf32>
    %226 = tpu.matmul %224, %225, %cst_61 {dimension_numbers = #tpu.dot_dimension_numbers<[1], [0], [0], [1], [0, 0, 1, 1], [], []>} : vector<8x64xf32>, vector<64x32xf32>, vector<8x32xf32> -> vector<8x32xf32>
    %227 = arith.addf %1, %226 : vector<8x32xf32>
    %cst_62 = arith.constant dense<0.000000e+00> : vector<8xf32>
    %228 = vector.multi_reduction <add>, %227, %cst_62 [1] : vector<8x32xf32> to vector<8xf32>
    %229 = vector.shape_cast %228 : vector<8xf32> to vector<8x1xf32>
    %cst_63 = arith.constant 3.200000e+01 : f32
    %230 = vector.broadcast %cst_63 : f32 to vector<8x1xf32>
    %231 = arith.divf %229, %230 : vector<8x1xf32>
    %232 = vector.broadcast %231 : vector<8x1xf32> to vector<8x32xf32>
    %233 = arith.subf %227, %232 : vector<8x32xf32>
    %234 = arith.mulf %233, %233 : vector<8x32xf32>
    %cst_64 = arith.constant dense<0.000000e+00> : vector<8xf32>
    %235 = vector.multi_reduction <add>, %234, %cst_64 [1] : vector<8x32xf32> to vector<8xf32>
    %236 = vector.shape_cast %235 : vector<8xf32> to vector<8x1xf32>
    %cst_65 = arith.constant 3.200000e+01 : f32
    %237 = vector.broadcast %cst_65 : f32 to vector<8x1xf32>
    %238 = arith.divf %236, %237 : vector<8x1xf32>
    %239 = vector.broadcast %231 : vector<8x1xf32> to vector<8x32xf32>
    %240 = arith.subf %227, %239 : vector<8x32xf32>
    %cst_66 = arith.constant 9.99999974E-6 : f32
    %241 = vector.broadcast %cst_66 : f32 to vector<8x1xf32>
    %242 = arith.addf %238, %241 : vector<8x1xf32>
    %243 = math.rsqrt %242 : vector<8x1xf32>
    %244 = vector.broadcast %243 : vector<8x1xf32> to vector<8x32xf32>
    %245 = arith.mulf %240, %244 : vector<8x32xf32>
    %246 = vector.broadcast %4 : vector<1x32xf32> to vector<8x32xf32>
    %247 = arith.mulf %245, %246 : vector<8x32xf32>
    %248 = vector.broadcast %5 : vector<1x32xf32> to vector<8x32xf32>
    %249 = arith.addf %247, %248 : vector<8x32xf32>
    %c0_67 = arith.constant 0 : index
    %c0_68 = arith.constant 0 : index
    %250 = vector.load %arg7[%c0_67, %c0_68] : memref<32x128xf32, #tpu.memory_space<vmem>>, vector<32x128xf32>
    %cst_69 = arith.constant dense<0.000000e+00> : vector<8x128xf32>
    %251 = tpu.matmul %249, %250, %cst_69 {dimension_numbers = #tpu.dot_dimension_numbers<[1], [0], [0], [1], [0, 0, 1, 1], [], []>} : vector<8x32xf32>, vector<32x128xf32>, vector<8x128xf32> -> vector<8x128xf32>
    %c0_70 = arith.constant 0 : index
    %c0_71 = arith.constant 0 : index
    %252 = vector.load %arg9[%c0_70, %c0_71] : memref<1x128xf32, #tpu.memory_space<vmem>>, vector<1x128xf32>
    %253 = vector.broadcast %252 : vector<1x128xf32> to vector<8x128xf32>
    %254 = arith.addf %251, %253 : vector<8x128xf32>
    %cst_72 = arith.constant 5.000000e-01 : f32
    %255 = vector.broadcast %cst_72 : f32 to vector<8x128xf32>
    %256 = arith.mulf %255, %254 : vector<8x128xf32>
    %cst_73 = arith.constant 4.471500e-02 : f32
    %257 = vector.broadcast %cst_73 : f32 to vector<8x128xf32>
    %258 = arith.mulf %257, %254 : vector<8x128xf32>
    %259 = arith.mulf %258, %254 : vector<8x128xf32>
    %260 = arith.mulf %259, %254 : vector<8x128xf32>
    %261 = arith.addf %254, %260 : vector<8x128xf32>
    %cst_74 = arith.constant 0.797884583 : f32
    %262 = vector.broadcast %cst_74 : f32 to vector<8x128xf32>
    %263 = arith.mulf %262, %261 : vector<8x128xf32>
    %264 = math.tanh %263 : vector<8x128xf32>
    %cst_75 = arith.constant 1.000000e+00 : f32
    %265 = vector.broadcast %cst_75 : f32 to vector<8x128xf32>
    %266 = arith.addf %265, %264 : vector<8x128xf32>
    %267 = arith.mulf %256, %266 : vector<8x128xf32>
    %c0_76 = arith.constant 0 : index
    %c0_77 = arith.constant 0 : index
    %268 = vector.load %arg8[%c0_76, %c0_77] : memref<128x32xf32, #tpu.memory_space<vmem>>, vector<128x32xf32>
    %cst_78 = arith.constant dense<0.000000e+00> : vector<8x32xf32>
    %269 = tpu.matmul %267, %268, %cst_78 {dimension_numbers = #tpu.dot_dimension_numbers<[1], [0], [0], [1], [0, 0, 1, 1], [], []>} : vector<8x128xf32>, vector<128x32xf32>, vector<8x32xf32> -> vector<8x32xf32>
    %270 = vector.broadcast %8 : vector<1x32xf32> to vector<8x32xf32>
    %271 = arith.addf %269, %270 : vector<8x32xf32>
    %cst_79 = arith.constant 5.000000e-01 : f32
    %272 = vector.broadcast %cst_79 : f32 to vector<8x32xf32>
    %273 = arith.mulf %272, %271 : vector<8x32xf32>
    %cst_80 = arith.constant 4.471500e-02 : f32
    %274 = vector.broadcast %cst_80 : f32 to vector<8x32xf32>
    %275 = arith.mulf %274, %271 : vector<8x32xf32>
    %276 = arith.mulf %275, %271 : vector<8x32xf32>
    %277 = arith.mulf %276, %271 : vector<8x32xf32>
    %278 = arith.addf %271, %277 : vector<8x32xf32>
    %cst_81 = arith.constant 0.797884583 : f32
    %279 = vector.broadcast %cst_81 : f32 to vector<8x32xf32>
    %280 = arith.mulf %279, %278 : vector<8x32xf32>
    %281 = math.tanh %280 : vector<8x32xf32>
    %cst_82 = arith.constant 1.000000e+00 : f32
    %282 = vector.broadcast %cst_82 : f32 to vector<8x32xf32>
    %283 = arith.addf %282, %281 : vector<8x32xf32>
    %284 = arith.mulf %273, %283 : vector<8x32xf32>
    %285 = arith.addf %249, %284 : vector<8x32xf32>
    %cst_83 = arith.constant dense<0.000000e+00> : vector<8xf32>
    %286 = vector.multi_reduction <add>, %285, %cst_83 [1] : vector<8x32xf32> to vector<8xf32>
    %287 = vector.shape_cast %286 : vector<8xf32> to vector<8x1xf32>
    %cst_84 = arith.constant 3.200000e+01 : f32
    %288 = vector.broadcast %cst_84 : f32 to vector<8x1xf32>
    %289 = arith.divf %287, %288 : vector<8x1xf32>
    %290 = vector.broadcast %289 : vector<8x1xf32> to vector<8x32xf32>
    %291 = arith.subf %285, %290 : vector<8x32xf32>
    %292 = arith.mulf %291, %291 : vector<8x32xf32>
    %cst_85 = arith.constant dense<0.000000e+00> : vector<8xf32>
    %293 = vector.multi_reduction <add>, %292, %cst_85 [1] : vector<8x32xf32> to vector<8xf32>
    %294 = vector.shape_cast %293 : vector<8xf32> to vector<8x1xf32>
    %cst_86 = arith.constant 3.200000e+01 : f32
    %295 = vector.broadcast %cst_86 : f32 to vector<8x1xf32>
    %296 = arith.divf %294, %295 : vector<8x1xf32>
    %297 = vector.broadcast %289 : vector<8x1xf32> to vector<8x32xf32>
    %298 = arith.subf %285, %297 : vector<8x32xf32>
    %cst_87 = arith.constant 9.99999974E-6 : f32
    %299 = vector.broadcast %cst_87 : f32 to vector<8x1xf32>
    %300 = arith.addf %296, %299 : vector<8x1xf32>
    %301 = math.rsqrt %300 : vector<8x1xf32>
    %302 = vector.broadcast %301 : vector<8x1xf32> to vector<8x32xf32>
    %303 = arith.mulf %298, %302 : vector<8x32xf32>
    %304 = vector.broadcast %6 : vector<1x32xf32> to vector<8x32xf32>
    %305 = arith.mulf %303, %304 : vector<8x32xf32>
    %306 = vector.broadcast %7 : vector<1x32xf32> to vector<8x32xf32>
    %307 = arith.addf %305, %306 : vector<8x32xf32>
    %c0_88 = arith.constant 0 : index
    %c0_89 = arith.constant 0 : index
    %c0_90 = arith.constant 0 : index
    %308 = vector.load %arg12[%c0_88, %c0_89, %c0_90] : memref<1x8x32xf32, #tpu.memory_space<vmem>>, vector<1x8x32xf32>
    %309 = vector.shape_cast %308 : vector<1x8x32xf32> to vector<8x32xf32>
    %310 = vector.shape_cast %307 : vector<8x32xf32> to vector<1x8x32xf32>
    tpu.vector_store %arg12[%c0_88, %c0_89, %c0_90], %310 {strides = array<i32>} : memref<1x8x32xf32, #tpu.memory_space<vmem>>, vector<1x8x32xf32>,
    return
  }
  func.func @transform_0(%arg0: i32) -> (i32, i32, i32) {
    %c0_i32 = arith.constant 0 : i32
    %c0_i32_0 = arith.constant 0 : i32
    %c0_i32_1 = arith.constant 0 : i32
    return %arg0, %c0_i32, %c0_i32_0 : i32, i32, i32
  }
  func.func @transform_1(%arg0: i32) -> (i32, i32) {
    %c0_i32 = arith.constant 0 : i32
    %c0_i32_0 = arith.constant 0 : i32
    %c0_i32_1 = arith.constant 0 : i32
    return %c0_i32, %c0_i32_0 : i32, i32
  }
  func.func @transform_2(%arg0: i32) -> (i32, i32) {
    %c0_i32 = arith.constant 0 : i32
    %c0_i32_0 = arith.constant 0 : i32
    %c0_i32_1 = arith.constant 0 : i32
    return %c0_i32, %c0_i32_0 : i32, i32
  }
  func.func @transform_3(%arg0: i32) -> (i32, i32) {
    %c0_i32 = arith.constant 0 : i32
    %c0_i32_0 = arith.constant 0 : i32
    %c0_i32_1 = arith.constant 0 : i32
    return %c0_i32, %c0_i32_0 : i32, i32
  }
  func.func @transform_4(%arg0: i32) -> (i32, i32) {
    %c0_i32 = arith.constant 0 : i32
    %c0_i32_0 = arith.constant 0 : i32
    %c0_i32_1 = arith.constant 0 : i32
    return %c0_i32, %c0_i32_0 : i32, i32
  }
  func.func @transform_5(%arg0: i32) -> (i32, i32) {
    %c0_i32 = arith.constant 0 : i32
    %c0_i32_0 = arith.constant 0 : i32
    %c0_i32_1 = arith.constant 0 : i32
    return %c0_i32, %c0_i32_0 : i32, i32
  }
  func.func @transform_6(%arg0: i32) -> (i32, i32) {
    %c0_i32 = arith.constant 0 : i32
    %c0_i32_0 = arith.constant 0 : i32
    %c0_i32_1 = arith.constant 0 : i32
    return %c0_i32, %c0_i32_0 : i32, i32
  }
  func.func @transform_7(%arg0: i32) -> (i32, i32) {
    %c0_i32 = arith.constant 0 : i32
    %c0_i32_0 = arith.constant 0 : i32
    %c0_i32_1 = arith.constant 0 : i32
    return %c0_i32, %c0_i32_0 : i32, i32
  }
  func.func @transform_8(%arg0: i32) -> (i32, i32) {
    %c0_i32 = arith.constant 0 : i32
    %c0_i32_0 = arith.constant 0 : i32
    %c0_i32_1 = arith.constant 0 : i32
    return %c0_i32, %c0_i32_0 : i32, i32
  }
  func.func @transform_9(%arg0: i32) -> (i32, i32) {
    %c0_i32 = arith.constant 0 : i32
    %c0_i32_0 = arith.constant 0 : i32
    %c0_i32_1 = arith.constant 0 : i32
    return %c0_i32, %c0_i32_0 : i32, i32
  }
  func.func @transform_10(%arg0: i32) -> (i32, i32) {
    %c0_i32 = arith.constant 0 : i32
    %c0_i32_0 = arith.constant 0 : i32
    %c0_i32_1 = arith.constant 0 : i32
    return %c0_i32, %c0_i32_0 : i32, i32
  }
  func.func @transform_11(%arg0: i32) -> (i32, i32, i32) {
    %c0_i32 = arith.constant 0 : i32
    %c0_i32_0 = arith.constant 0 : i32
    %c0_i32_1 = arith.constant 0 : i32
    return %arg0, %c0_i32, %c0_i32_0 : i32, i32, i32
  }
}

</mosaic_0001>

<bundles_post_ra>
// kernel: tpu_custom_call.1
= control target key start
LH: loop header
LB: loop body
LE: loop exit
PB: predicated region body
PF: predicated region fallthrough
CT: control target
= control target key end

     0   :  { %s2484_s0 = inlined_call_operand.vmem [shape: f32[2,8,32], index: 0, kind: input, shape index: {}]   ;;  %s2485_s1 = inlined_call_operand.vmem [shape: f32[32,128], index: 1, kind: input, shape index: {}]   ;;  %s2486_s2 = inlined_call_operand.vmem [shape: f32[4,64], index: 2, kind: input, shape index: {}]   ;;  %s2487_s3 = inlined_call_operand.vmem [shape: f32[64,96], index: 3, kind: input, shape index: {}]   ;;  %s2488_s4 = inlined_call_operand.vmem [shape: f32[16,64], index: 4, kind: input, shape index: {}]   ;;  %s2489_s5 = inlined_call_operand.vmem [shape: f32[64,32], index: 5, kind: input, shape index: {}]   ;;  %s2490_s6 = inlined_call_operand.vmem [shape: f32[32,128], index: 6, kind: input, shape index: {}]   ;;  %s2491_s7 = inlined_call_operand.vmem [shape: f32[128,32], index: 7, kind: input, shape index: {}]   ;;  %s2492_s8 = inlined_call_operand.vmem [shape: f32[1,128], index: 8, kind: input, shape index: {}]   ;;  %s2493_s9 = inlined_call_operand.vmem [shape: f32[5,32], index: 9, kind: input, shape index: {}]   ;;  %s2494_s10 = inlined_call_operand.vmem [shape: f32[3,64], index: 10, kind: input, shape index: {}]   ;;  %s2495_s11 = inlined_call_operand.hbm [shape: f32[2,8,32], index: 11, kind: output, shape index: {}]  }
   0x1   :  { %2496 = sst [smem:[#allocation7_spill]] %s2484_s0 }
   0x2   :  { %2497 = sst [smem:[#allocation8_spill]] %s2485_s1 }
   0x3   :  { %16 = vsyncpa [#allocation5], 0 }
   0x4   :  { %18 = vsyncpa [#allocation5 + $0x1], 0  ;;  %s1917_s17 = smov 0   ;;  %s1919_s18 = smov 0  }
   0x5   :  { %s1921_s19 = smov 0   ;;  %s1923_s20 = smov 0  }
   0x6 LB: > { %s1938_s21 = sadd.s32 4294967295, %s1842_s20   ;;  %s1488_s22 = sadd.s32 4294967294, %s1842_s20   ;;  %s1842_s20 = sphi %s1923_s20, %s2505_s20   ;;  %s1838_s19 = sphi %s1921_s19, %s2504_s19   ;;  %s1834_s18 = sphi %s1919_s18, %s2503_s18   ;;  %s1830_s17 = sphi %s1917_s17, %s2502_s17  }
   0x7   : > { %s1942_s23 = sadd.s32 1, %s1842_s20   ;;  %s267_s24 = sadd.s32 1, %s1838_s19 }
   0x8   : > { %s264_s25 = ssub.s32 %s1842_s20, %s1942_s23  ;;  %p277_p0 = scmp.ne.s32.totalorder %s1838_s19, %s1834_s18 }
   0x9   : > { %p265_p1 = scmp.eq.s32.totalorder %s264_s25, 0  ;;  %p278_p2 = scmp.eq.s32.totalorder %s1938_s21, 1 }
   0xa   : > { %p283_p3 = scmp.ne.s32.totalorder %s1834_s18, %s1830_s17  ;;  %p284_p4 = scmp.eq.s32.totalorder %s1488_s22, 1 }
   0xb   : > { %s1953_s26 = scalar_select %p265_p1, %s1838_s19, %s267_s24  }
   0xc   : > { %p1955_p5 = por %p278_p2, %p277_p0  ;;  %p1959_p6 = por %p284_p4, %p283_p3 }
   0xd   : > { %p1491_p7 = scmp.ge.s32.totalorder %s1842_s20, 1  ;;  %p339_p8 = scmp.lt.s32.totalorder %s1842_s20, 3 }
   0xf   : > { %p340_p9 = pnand %p1491_p7, %p339_p8 }
  0x10   : > { %s2500_s1 = sld [smem:[#allocation8_spill]] (!%p340_p9)  ;;  %p378_p10 = scmp.lt.s32.totalorder (!%p340_p9), %s1938_s21, 1 }
  0x11   : > { %343 = sbr.rel (%p340_p9) target bundleno = 2221 (0x8ad), region = 64  ;;  %s2501_s0 = sld [smem:[#allocation7_spill]] (!%p340_p9) }
  0x12   : > { %s1847_s13 = smov (!%p340_p9), 64   ;;  %s375_s25 = sand.u32 (!%p340_p9), 1, %s1834_s18  }
  0x13   : > { %s1492_s29 = sshll.u32 (!%p340_p9), %s375_s25, 3  ;;  %s1500_s30 = sshll.u32 (!%p340_p9), %s1938_s21, 7 }
  0x14   : > { %s1427_s16 = scalar_lea.hbm (!%p340_p9), %s2495_s11, %s1500_s30 }
  0x16   : > { %v388_v0 = vld [vmem:[%s2500_s1 + $0x18] sm:$0xff]  ;;  %v1844_v1 = vmov 0.0   ;;  %v387_v2 = vld [vmem:[%s2500_s1 + $0x10] sm:$0xff]  ;;  %vm1845_vm0 = vmmov 0   ;;  %s379_s14 = scalar_select %p378_p10, %s1938_s21, 1  ;;  %v386_v3 = vld [vmem:[%s2500_s1 + $0x8] sm:$0xff]  ;;  %v469_v14 = vlaneseq }
  0x17   : > { %1548 = vmatprep.subr.mxu0 %v1844_v1  ;;  %1556 = vmatprep.mubr.msk.f32.mxu0 %vm1845_vm0, %v1844_v1  ;;  %v385_v4 = vld [vmem:[%s2500_s1] sm:$0xff]  ;;  %vm389_vm1 = vcmask 261120   ;;  %vm463_vm2 = vcmask 523264   ;;  %vm465_vm3 = vcmask 518144   ;;  %v516_v6 = vld [vmem:[%s2487_s3 + $0x38] sm:$0xff]  ;;  %v515_v7 = vld [vmem:[%s2487_s3 + $0x30] sm:$0xff] }
  0x18   : > { %1549 = vmatpush3.msra.mxu0 %v388_v0  ;;  %1559 = vmatprep.subr.mxu1 %v1844_v1  ;;  %s1493_s22 = sshll.u32 %s379_s14, 3  ;;  %464 = vst.msk [vmem:[#allocation2] sm:$0xff] %vm463_vm2, %v1844_v1  ;;  %v514_v8 = vld [vmem:[%s2487_s3 + $0x28] sm:$0xff]  ;;  %v513_v9 = vld [vmem:[%s2487_s3 + $0x20] sm:$0xff]  ;;  %v512_v10 = vld [vmem:[%s2487_s3 + $0x18] sm:$0xff]  ;;  %v2033_v15 = vshrl.u32 %v469_v14, 7 }
  0x19   : > { %1550 = vmatprep.subr.mxu0 %v1844_v1  ;;  %1575 = vmatprep.mubr.msk.f32.mxu1 %vm1845_vm0, %v1844_v1  ;;  %s381_s12 = scalar_lea.vmem %s2501_s0, %s1493_s22  ;;  %466 = vst.msk [vmem:[#allocation2 + $0x8] sm:$0x7] %vm465_vm3, %v1844_v1  ;;  %v511_v11 = vld [vmem:[%s2487_s3 + $0x10] sm:$0xff]  ;;  %v510_v12 = vld [vmem:[%s2487_s3 + $0x8] sm:$0xff]  ;;  %v509_v13 = vld [vmem:[%s2487_s3] sm:$0xff]  ;;  %v1846_v47 = vmov 0  }
  0x1a   : > { %1551 = vmatpush3.msra.mxu0 %v387_v2  ;;  %v1990_v5 = vld [vmem:[%s381_s12] sm:$0xff]  ;;  %1560 = vmatpush3.msra.mxu1 %v516_v6  ;;  %v2040_v17 = vsub.s32 0, %v2033_v15  ;;  %v2046_v20 = vsub.s32 1, %v2033_v15  ;;  %v2055_v23 = vsub.s32 2, %v2033_v15  ;;  %v2061_v26 = vsub.s32 3, %v2033_v15  ;;  %s1848_s14 = smov 48  }
  0x1b   : > { %1552 = vmatprep.subr.mxu0 %v1844_v1  ;;  %1561 = vmatprep.subr.mxu1 %v1844_v1  ;;  %v468_v19 = vld [vmem:[%s2486_s2] sm:$0xf]  ;;  %v1849_v52 = vmov 4   ;;  %v1850_v54 = vmov 1   ;;  %v1851_v55 = vmov 5   ;;  %v1852_v57 = vmov 2  }
  0x1c   : > { %1553 = vmatpush3.msra.mxu0 %v386_v3  ;;  %1562 = vmatpush3.msra.mxu1 %v515_v7  ;;  %v2051_v21 = vld [vmem:[%s2494_s10] sm:$0x7]  ;;  %v478_v22 = vrot.slane %v468_v19, %v2040_v17  ;;  %v485_v25 = vrot.slane %v468_v19, %v2046_v20  ;;  %v492_v30 = vrot.slane %v468_v19, %v2055_v23  ;;  %v1853_v58 = vmov 7   ;;  %s377_s12 = scalar_lea.vmem [#allocation4], %s1492_s29  ;;  %s1416_s22 = scalar_lea.sflag [#allocation5], %s375_s25 }
  0x1d   : > { %1554 = vmatprep.subr.mxu0 %v1844_v1  ;;  %1563 = vmatprep.subr.mxu1 %v1844_v1  ;;  %v472_v24 = vrot.slane %v2051_v21, %v2040_v17  ;;  %v499_v34 = vrot.slane %v468_v19, %v2061_v26  ;;  %v1854_v60 = vmov 3   ;;  %v1855_v61 = vmov 6   ;;  %s1856_s0 = smov [#allocation4]  }
  0x1e   : > { %1555 = vmatpush3.msra.mxu0 %v385_v4  ;;  %1564 = vmatpush3.msra.mxu1 %v514_v8  ;;  %v593_v62 = vrot.slane %v2051_v21, %v2046_v20  ;;  %vm735_vm4 = vcmask 516096   ;;  %s1786_s1 = sshll.u32 %s1856_s0, 4  ;;  %s1787_s1 = int_to_ptr.vmem [resolvable:$false] %s1786_s1 }
  0x1f   : > { %1557 = vmatmul.mubr.msk.f32.vlgmr.msra.gmra.mxu0 %vm389_vm1, %v1990_v5  ;;  %1608 = vmatprep.subr.mxu0 %v1844_v1  ;;  %s1788_s21 = scalar_lea.vmem %s1787_s1, 256 }
  0x20   : > { %1640 = vmatprep.mubr.msk.f32.mxu0 %vm1845_vm0, %v1844_v1  ;;  %1565 = vmatprep.subr.mxu1 %v1844_v1 }
  0x21   : > { %1566 = vmatpush3.msra.mxu1 %v513_v9  ;;  %1694 = vset.pattern.permute.xlu0 %v1846_v47 }
  0x22   : > { %1567 = vmatprep.subr.mxu1 %v1844_v1 }
  0x23   : > { %1568 = vmatpush3.msra.mxu1 %v512_v10 }
  0x24   : > { %1569 = vmatprep.subr.mxu1 %v1844_v1 }
  0x25   : > { %1570 = vmatpush3.msra.mxu1 %v511_v11 }
  0x26   : > { %1571 = vmatprep.subr.mxu1 %v1844_v1 }
  0x27   : > { %1572 = vmatpush3.msra.mxu1 %v510_v12  ;;  %v675_v12 = vld [vmem:[%s2488_s4] sm:$0xff] }
  0x28   : > { %1573 = vmatprep.subr.mxu1 %v1844_v1 }
  0x29   : > { %1574 = vmatpush3.msra.mxu1 %v509_v13  ;;  %v677_v13 = vmul.f32 1.442695, %v675_v12 }
  0x2a   : > { %1578 = vmatprep.subr.mxu1 %v1844_v1 }
  0xdf   : > { %v2035_v16 = vpop.f32.mrf.mxu0 }
  0xe0   : > { %467 = vst.msk [vmem:[#allocation2 + $0x3] sm:$0xff] %vm463_vm2, %v2035_v16  ;;  %v1080_v2 = vsub.f32 0.0, %v2035_v16 }
  0xe1   : > { %v1558_v18 = vpop.f32.mrf.mxu0 }
  0xe2   : > { %v1081_v4 = vmul.f32 1.442695, %v1080_v2 }
  0xe7   : > { %v474_v27 = vld [vmem:[#allocation2] sm:$0xff] }
  0xe8   : > { %v481_v28 = vld [vmem:[#allocation2 + $0x1] sm:$0xff]  ;;  %v479_v29 = vmul.f32 %v478_v22, %v474_v27 }
  0xe9   : > { %v488_v31 = vld [vmem:[#allocation2 + $0x2] sm:$0xff]  ;;  %v486_v33 = vmul.f32 %v485_v25, %v481_v28 }
  0xea   : > { %v480_v32 = vadd.f32 %v479_v29, %v472_v24  ;;  %v495_v35 = vld [vmem:[#allocation2 + $0x3] sm:$0xff]  ;;  %v493_v37 = vmul.f32 %v492_v30, %v488_v31 }
  0xeb   : > { %v500_v39 = vmul.f32 %v499_v34, %v495_v35  ;;  %v1099_v34 = vld [vmem:[%s2489_s5 + $0x38] sm:$0xff]  ;;  %v1098_v35 = vld [vmem:[%s2489_s5 + $0x30] sm:$0xff] }
  0xec   : > { %v487_v36 = vadd.f32 %v486_v33, %v480_v32 }
  0xee   : > { %v494_v38 = vadd.f32 %v493_v37, %v487_v36  ;;  %v1097_v37 = vld [vmem:[%s2489_s5 + $0x28] sm:$0xff] }
  0xf0   : > { %v501_v40 = vadd.f32 %v500_v39, %v494_v38 }
  0xf2   : > { %v502_v41 = vsub.f32 0.0, %v501_v40 }
  0xf4   : > { %v503_v42 = vmul.f32 1.442695, %v502_v41  ;;  %v676_v41 = vld [vmem:[%s2488_s4 + $0x8] sm:$0xff] }
  0xf6   : > { %1726 = vpow2.f32 %v503_v42  ;;  %v2140_v42 = vsub.s32 4, %v2033_v15 }
 0x103   : > { %v1727_v43 = vpop.eup %1726 }
 0x104   : > { %v505_v44 = vadd.f32 1.0, %v1727_v43  ;;  %v1095_v43 = vld [vmem:[%s2489_s5 + $0x18] sm:$0xff] }
 0x106   : > { %1728 = vrcp.f32 %v505_v44 }
 0x107   : > { %1730 = vpow2.f32 %v1081_v4 }
 0x113   : > { %v1729_v45 = vpop.eup %1728 }
 0x114   : > { %v2065_v46 = vmul.f32 %v1729_v45, %v501_v40  ;;  %v1731_v8 = vpop.eup %1730  ;;  %v1096_v40 = vld [vmem:[%s2489_s5 + $0x20] sm:$0xff]  ;;  %v679_v45 = vmul.f32 1.442695, %v676_v41 }
 0x115   : > { %v1083_v10 = vadd.f32 1.0, %v1731_v8 }
 0x116   : > { %1576 = vmatmul.mubr.msk.f32.vlgmr.msra.gmra.mxu1 %vm463_vm2, %v2065_v46 }
 0x117   : > { %1594 = vmatprep.mubr.msk.f32.mxu1 %vm1845_vm0, %v1844_v1  ;;  %1579 = vmatpush3.msra.mxu1 %v1099_v34 }
 0x118   : > { %1580 = vmatprep.subr.mxu1 %v1844_v1 }
 0x119   : > { %1581 = vmatpush3.msra.mxu1 %v1098_v35 }
 0x11a   : > { %1582 = vmatprep.subr.mxu1 %v1844_v1 }
 0x11b   : > { %1583 = vmatpush3.msra.mxu1 %v1097_v37 }
 0x11c   : > { %1584 = vmatprep.subr.mxu1 %v1844_v1 }
 0x11d   : > { %1585 = vmatpush3.msra.mxu1 %v1096_v40 }
 0x11e   : > { %1586 = vmatprep.subr.mxu1 %v1844_v1 }
 0x11f   : > { %1587 = vmatpush3.msra.mxu1 %v1095_v43 }
 0x120   : > { %1588 = vmatprep.subr.mxu1 %v1844_v1 }
 0x1d6   : > { %v586_v48 = vpop.f32.mrf.mxu1 }
 0x1d7   : > { %605 = vrot.lane.b32.xlu0 %v586_v48, %s1847_s13  ;;  %v594_v63 = vadd.f32 %v593_v62, %v586_v48 }
 0x1d8   : > { %v1577_v49 = vpop.f32.mrf.mxu1 }
 0x1d9   : > { %v596_v0 = vand.u32 2147483647, %v594_v63  ;;  %v595_v24 = vmax.f32 %v594_v63, 0.0 }
 0x1db   : > { %640 = vrot.lane.b32.xlu0 %v586_v48, %s1848_s14  ;;  %v597_v3 = vsub.f32 0.0, %v596_v0  ;;  %v1094_v48 = vld [vmem:[%s2489_s5 + $0x10] sm:$0xff]  ;;  %v1027_v0 = vsub.s32 7, %v2033_v15 }
 0x1dc   : > { %1589 = vmatpush3.msra.mxu1 %v1094_v48 }
 0x1dd   : > { %v598_v6 = vmul.f32 1.442695, %v597_v3  ;;  %1590 = vmatprep.subr.mxu1 %v1844_v1 }
 0x1df   : > { %1732 = vpow2.f32 %v598_v6 }
 0x1e0   : > { %1734 = vrcp.f32 %v1083_v10 }
 0x1ec   : > { %v1733_v9 = vpop.eup %1732 }
 0x1ed   : > { %v600_v11 = vadd.f32 1.0, %v1733_v9  ;;  %v1735_v14 = vpop.eup %1734 }
 0x1ee   : > { %v1086_v19 = vmul.f32 %v1735_v14, %v2035_v16 }
 0x1ef   : > { %1736 = vlog2.f32 %v600_v11 }
 0x1f0   : > { %1738 = vpow2.f32 %v677_v13 }
 0x1fc   : > { %v1737_v18 = vpop.eup %1736 }
 0x1fd   : > { %v602_v22 = vmul.f32 0.6931472, %v1737_v18  ;;  %v1739_v27 = vpop.eup %1738 }
 0x1fe   : > { %v2098_v28 = vsub.f32 0.0, %v1739_v27 }
 0x1ff   : > { %v2096_v25 = vadd.f32 %v602_v22, %v595_v24 }
 0x201   : > { %v2102_v29 = vrot.slane %v2096_v25, %v2040_v17  ;;  %v2108_v31 = vrot.slane %v2096_v25, %v2046_v20  ;;  %v2114_v33 = vrot.slane %v2096_v25, %v2055_v23  ;;  %v2130_v39 = vrot.slane %v2096_v25, %v2061_v26 }
 0x202   : > { %v2154_v49 = vrot.slane %v2096_v25, %v2140_v42  ;;  %v2200_v12 = vrot.slane %v2096_v25, %v1027_v0 }
 0x203   : > { %v688_v30 = vmul.f32 %v2102_v29, %v2098_v28  ;;  %v741_v32 = vmul.f32 %v2108_v31, %v2098_v28  ;;  %v789_v38 = vmul.f32 %v2114_v33, %v2098_v28 }
 0x205   : > { %v690_v16 = vmul.f32 1.442695, %v688_v30  ;;  %v743_v36 = vmul.f32 1.442695, %v741_v32  ;;  %v791_v44 = vmul.f32 1.442695, %v789_v38  ;;  %v1029_v32 = vmul.f32 %v2200_v12, %v2098_v28 }
 0x207   : > { %1740 = vpow2.f32 %v690_v16  ;;  %v1031_v43 = vmul.f32 1.442695, %v1029_v32 }
 0x208   : > { %1742 = vpow2.f32 %v743_v36 }
 0x209   : > { %1744 = vpow2.f32 %v791_v44 }
 0x20a   : > { %1746 = vpow2.f32 %v679_v45 }
 0x249   : > { %v606_v50 = vpop.permute.xlu0 %605 }
 0x24a   : > { %608 = vxpose.xlu1.b32.start.end [1/1] (short) (narrow) %v606_v50, 16  ;;  %v931_v50 = vsub.s32 5, %v2033_v15 }
 0x24d   : > { %v641_v51 = vpop.permute.xlu0 %640 }
 0x24f   : > { %643 = vxpose.xlu1.b32.start.end [1/1] (short) (narrow) %v641_v51, 16  ;;  %v2159_v51 = vmul.f32 %v2096_v25, %v2065_v46 }
 0x251   : > { %v2196_v8 = vrot.slane %v2159_v51, %v2046_v20  ;;  %v2209_v24 = vrot.slane %v2159_v51, %v2055_v23  ;;  %v2212_v27 = vrot.slane %v2159_v51, %v1027_v0  ;;  %v2225_v44 = vrot.slane %v2159_v51, %v2061_v26 }
 0x26d   : > { %1698 = vset.pattern.permute.xlu1 %v1849_v52 }
 0x2c6   : > { %v624_v53 = vpop.trf.xlu1 }
 0x2c7   : > { %698 = vperm.xlu0 %1694, %v624_v53   ;;  %894 = vperm.xlu1 %1698, %v624_v53  }
 0x2ca   : > { %v625_v56 = vpop.trf.xlu1 }
 0x2cb   : > { %1695 = vset.pattern.permute.xlu0 %v1850_v54  ;;  %1699 = vset.pattern.permute.xlu1 %v1851_v55 }
 0x2cc   : > { %750 = vperm.xlu0 %1695, %v624_v53   ;;  %942 = vperm.xlu1 %1699, %v624_v53  }
 0x2ce   : > { %v659_v59 = vpop.trf.xlu1 }
 0x2d0   : > { %1696 = vset.pattern.permute.xlu0 %v1852_v57  ;;  %1701 = vset.pattern.permute.xlu1 %v1853_v58 }
 0x2d1   : > { %798 = vperm.xlu0 %1696, %v624_v53   ;;  %1038 = vperm.xlu1 %1701, %v624_v53  }
 0x2d2   : > { %v660_v7 = vpop.trf.xlu1 }
 0x2d5   : > { %1697 = vset.pattern.permute.xlu0 %v1854_v60  ;;  %1702 = vset.pattern.permute.xlu1 %v1846_v47 }
 0x2d6   : > { %846 = vperm.xlu0 %1697, %v624_v53   ;;  %716 = vperm.xlu1 %1702, %v659_v59  }
 0x2da   : > { %1700 = vset.pattern.permute.xlu0 %v1855_v61  ;;  %1704 = vset.pattern.permute.xlu1 %v1852_v57 }
 0x2db   : > { %990 = vperm.xlu0 %1700, %v624_v53   ;;  %814 = vperm.xlu1 %1704, %v659_v59  }
 0x2df   : > { %1703 = vset.pattern.permute.xlu0 %v1850_v54  ;;  %1705 = vset.pattern.permute.xlu1 %v1854_v60 }
 0x2e0   : > { %766 = vperm.xlu0 %1703, %v659_v59   ;;  %862 = vperm.xlu1 %1705, %v659_v59  }
 0x2e4   : > { %1706 = vset.pattern.permute.xlu0 %v1849_v52  ;;  %1707 = vset.pattern.permute.xlu1 %v1851_v55 }
 0x2e5   : > { %910 = vperm.xlu0 %1706, %v659_v59   ;;  %958 = vperm.xlu1 %1707, %v659_v59  }
 0x2e9   : > { %1710 = vset.pattern.permute.xlu0 %v1850_v54  ;;  %1708 = vset.pattern.permute.xlu1 %v1855_v61 }
 0x2ea   : > { %754 = vperm.xlu0 %1710, %v625_v56   ;;  %1006 = vperm.xlu1 %1708, %v659_v59  }
 0x2ee   : > { %1711 = vset.pattern.permute.xlu0 %v1852_v57  ;;  %1709 = vset.pattern.permute.xlu1 %v1846_v47 }
 0x2ef   : > { %802 = vperm.xlu0 %1711, %v625_v56   ;;  %703 = vperm.xlu1 %1709, %v625_v56  }
 0x2f3   : > { %1713 = vset.pattern.permute.xlu0 %v1849_v52  ;;  %1712 = vset.pattern.permute.xlu1 %v1854_v60 }
 0x2f4   : > { %898 = vperm.xlu0 %1713, %v625_v56   ;;  %850 = vperm.xlu1 %1712, %v625_v56  }
 0x2f8   : > { %1716 = vset.pattern.permute.xlu0 %v1853_v58  ;;  %1714 = vset.pattern.permute.xlu1 %v1851_v55 }
 0x2f9   : > { %1042 = vperm.xlu0 %1716, %v625_v56   ;;  %946 = vperm.xlu1 %1714, %v625_v56  }
 0x2fd   : > { %1719 = vset.pattern.permute.xlu0 %v1852_v57  ;;  %1715 = vset.pattern.permute.xlu1 %v1855_v61  ;;  %v2174_v57 = vrot.slane %v2096_v25, %v931_v50 }
 0x2fe   : > { %994 = vperm.xlu1 %1715, %v625_v56   ;;  %818 = vperm.xlu0 %1719, %v660_v7   ;;  %v885_v56 = vmul.f32 %v2154_v49, %v2098_v28 }
 0x2ff   : > { %v933_v3 = vmul.f32 %v2174_v57, %v2098_v28 }
 0x300   : > { %v887_v2 = vmul.f32 1.442695, %v885_v56 }
 0x301   : > { %v935_v14 = vmul.f32 1.442695, %v933_v3 }
 0x302   : > { %1717 = vset.pattern.permute.xlu1 %v1846_v47  ;;  %1722 = vset.pattern.permute.xlu0 %v1851_v55  ;;  %v837_v47 = vmul.f32 %v2130_v39, %v2098_v28  ;;  %v1741_v55 = vpop.eup %1740 }
 0x303   : > { %962 = vperm.xlu0 %1722, %v660_v7   ;;  %721 = vperm.xlu1 %1717, %v660_v7   ;;  %v694_v62 = vmul.f32 0.0, %v1741_v55 }
 0x304   : > { %v839_v53 = vmul.f32 1.442695, %v837_v47 }
 0x306   : > { %1748 = vpow2.f32 %v839_v53  ;;  %v2235_v53 = vrot.slane %v2159_v51, %v2140_v42 }
 0x307   : > { %1723 = vset.pattern.permute.xlu0 %v1853_v58  ;;  %1718 = vset.pattern.permute.xlu1 %v1850_v54  ;;  %v1092_v54 = vld [vmem:[%s2489_s5] sm:$0xff]  ;;  %1750 = vpow2.f32 %v887_v2  ;;  %v2244_v2 = vrot.slane %v2159_v51, %v931_v50 }
 0x308   : > { %1054 = vperm.xlu0 %1723, %v659_v59   ;;  %770 = vperm.xlu1 %1718, %v660_v7   ;;  %v2179_v59 = vrot.slane %v2159_v51, %v2040_v17  ;;  %1752 = vpow2.f32 %v935_v14 }
 0x30c   : > { %1720 = vset.pattern.permute.xlu1 %v1854_v60 }
 0x30d   : > { %866 = vperm.xlu1 %1720, %v660_v7  }
 0x311   : > { %1721 = vset.pattern.permute.xlu1 %v1849_v52  ;;  %v1093_v52 = vld [vmem:[%s2489_s5 + $0x8] sm:$0xff] }
 0x312   : > { %914 = vperm.xlu1 %1721, %v660_v7   ;;  %1591 = vmatpush3.msra.mxu1 %v1093_v52 }
 0x313   : > { %1592 = vmatprep.subr.mxu1 %v1844_v1 }
 0x314   : > { %1593 = vmatpush3.msra.mxu1 %v1092_v54 }
 0x315   : > { %1597 = vmatprep.subr.mxu1 %v1844_v1 }
 0x316   : > { %1724 = vset.pattern.permute.xlu1 %v1855_v61 }
 0x317   : > { %1010 = vperm.xlu1 %1724, %v660_v7  }
 0x31b   : > { %1725 = vset.pattern.permute.xlu1 %v1853_v58  ;;  %v979_v58 = vsub.s32 6, %v2033_v15 }
 0x31c   : > { %1058 = vperm.xlu1 %1725, %v660_v7   ;;  %v1743_v7 = vpop.eup %1742 }
 0x31d   : > { %v2190_v4 = vrot.slane %v2096_v25, %v979_v58  ;;  %v1745_v22 = vpop.eup %1744  ;;  %v2259_v50 = vrot.slane %v2159_v51, %v979_v58 }
 0x31e   : > { %v1747_v30 = vpop.eup %1746 }
 0x31f   : > { %v981_v18 = vmul.f32 %v2190_v4, %v2098_v28  ;;  %v2219_v38 = vsub.f32 0.0, %v1747_v30  ;;  %v1749_v41 = vpop.eup %1748 }
 0x320   : > { %1088 = vrot.lane.b32.xlu1 %v1086_v19, %s1847_s13  ;;  %v1751_v55 = vpop.eup %1750  ;;  %s1429_s13 = sshll.u32 %s377_s12, 4  ;;  %s1430_s13 = int_to_ptr.vmem [resolvable:$true] %s1429_s13 }
 0x321   : > { %v983_v34 = vmul.f32 1.442695, %v981_v18  ;;  %v689_v52 = vmul.f32 %v2102_v29, %v2219_v38  ;;  %v1753_v3 = vpop.eup %1752  ;;  %v838_v58 = vmul.f32 %v2130_v39, %v2219_v38  ;;  %s1782_s24 = scalar_lea.vmem %s1430_s13, 128  ;;  %p1789_p0 = scmp.lt.s32.totalorder %s1430_s13, %s1787_s1 }
 0x322   : > { %p1783_p11 = scmp.ne.s32.totalorder %s1430_s13, %s1782_s24  ;;  %p1790_p1 = scmp.lt.s32.totalorder %s1788_s21, %s1782_s24 }
 0x323   : > { %1754 = vpow2.f32 %v983_v34  ;;  %v692_v0 = vmul.f32 1.442695, %v689_v52 }
 0x324   : > { %1756 = vpow2.f32 %v1031_v43  ;;  %v841_v43 = vmul.f32 1.442695, %v838_v58  ;;  %p1784_p12 = pnand %p1783_p11, %p1955_p5  ;;  %p1791_p2 = por %p1790_p1, %p1789_p0 }
 0x325   : > { %1758 = vpow2.f32 %v692_v0 }
 0x326   : > { %p1785_p13 = pneg %p1784_p12 }
 0x328   : > { %p1792_p3 = pnand %p1791_p2, %p1785_p13 }
 0x330   : > { %v1755_v18 = vpop.eup %1754 }
 0x331   : > { %v1757_v15 = vpop.eup %1756 }
 0x342   : > { %v699_v60 = vpop.permute.xlu0 %698  ;;  %v895_v61 = vpop.permute.xlu1 %894 }
 0x343   : > { %v710_v63 = vmul.f32 %v2179_v59, %v699_v60  ;;  %v905_v56 = vmul.f32 %v2235_v53, %v895_v61 }
 0x345   : > { %v2192_v6 = vadd.f32 %v710_v63, %v694_v62 }
 0x347   : > { %v751_v9 = vpop.permute.xlu0 %750  ;;  %v747_v10 = vmul.f32 %v1743_v7, %v2192_v6  ;;  %v943_v11 = vpop.permute.xlu1 %942  ;;  %v742_v7 = vmul.f32 %v2108_v31, %v2219_v38  ;;  %v790_v31 = vmul.f32 %v2114_v33, %v2219_v38  ;;  %v886_v33 = vmul.f32 %v2154_v49, %v2219_v38 }
 0x348   : > { %v761_v13 = vmul.f32 %v2196_v8, %v751_v9  ;;  %v953_v9 = vmul.f32 %v2244_v2, %v943_v11 }
 0x349   : > { %v793_v51 = vmul.f32 1.442695, %v790_v31 }
 0x34a   : > { %v2205_v19 = vadd.f32 %v761_v13, %v747_v10 }
 0x34c   : > { %v799_v25 = vpop.permute.xlu0 %798  ;;  %v1039_v16 = vpop.permute.xlu1 %1038  ;;  %v795_v35 = vmul.f32 %v1745_v22, %v2205_v19  ;;  %v745_v22 = vmul.f32 1.442695, %v742_v7 }
 0x34d   : > { %v809_v36 = vmul.f32 %v2209_v24, %v799_v25  ;;  %v1049_v37 = vmul.f32 %v2212_v27, %v1039_v16 }
 0x34e   : > { %1760 = vpow2.f32 %v745_v22 }
 0x34f   : > { %v2221_v40 = vadd.f32 %v809_v36, %v795_v35  ;;  %1762 = vpow2.f32 %v793_v51 }
 0x350   : > { %1764 = vpow2.f32 %v841_v43 }
 0x351   : > { %v847_v45 = vpop.permute.xlu0 %846  ;;  %v2227_v28 = vpop.permute.xlu1 %716  ;;  %v843_v47 = vmul.f32 %v1749_v41, %v2221_v40 }
 0x352   : > { %v857_v48 = vmul.f32 %v2225_v44, %v847_v45  ;;  %v1759_v45 = vpop.eup %1758 }
 0x354   : > { %v2237_v54 = vadd.f32 %v857_v48, %v843_v47  ;;  %v889_v47 = vmul.f32 1.442695, %v886_v33  ;;  %v934_v48 = vmul.f32 %v2174_v57, %v2219_v38  ;;  %v982_v57 = vmul.f32 %v2190_v4, %v2219_v38 }
 0x356   : > { %v991_v60 = vpop.permute.xlu0 %990  ;;  %v815_v62 = vpop.permute.xlu1 %814  ;;  %v891_v63 = vmul.f32 %v1751_v55, %v2237_v54  ;;  %v695_v55 = vmul.f32 0.0, %v1759_v45  ;;  %1766 = vpow2.f32 %v889_v47  ;;  %v1030_v47 = vmul.f32 %v2200_v12, %v2219_v38 }
 0x357   : > { %v1001_v11 = vmul.f32 %v2259_v50, %v991_v60  ;;  %v821_v58 = vmul.f32 %v815_v62, %v2221_v40 }
 0x358   : > { %v2246_v29 = vadd.f32 %v905_v56, %v891_v63  ;;  %v937_v56 = vmul.f32 1.442695, %v934_v48  ;;  %v724_v48 = vmul.f32 %v2227_v28, %v2192_v6 }
 0x35a   : > { %v939_v61 = vmul.f32 %v1753_v3, %v2246_v29  ;;  %1768 = vpow2.f32 %v937_v56 }
 0x35b   : > { %v2252_v10 = vpop.permute.xlu0 %766  ;;  %v2254_v13 = vpop.permute.xlu1 %862 }
 0x35c   : > { %v2261_v14 = vadd.f32 %v953_v9, %v939_v61  ;;  %v1761_v49 = vpop.eup %1760 }
 0x35d   : > { %v1763_v61 = vpop.eup %1762 }
 0x35e   : > { %v987_v30 = vmul.f32 %v1755_v18, %v2261_v14 }
 0x360   : > { %v2267_v25 = vpop.permute.xlu0 %910  ;;  %v2269_v16 = vpop.permute.xlu1 %958  ;;  %v2271_v32 = vadd.f32 %v1001_v11, %v987_v30 }
 0x361   : > { %v1765_v30 = vpop.eup %1764  ;;  %v965_v12 = vmul.f32 %v2269_v16, %v2261_v14 }
 0x362   : > { %v1035_v34 = vmul.f32 %v1757_v15, %v2271_v32  ;;  %v985_v15 = vmul.f32 1.442695, %v982_v57 }
 0x363   : > { %v1767_v43 = vpop.eup %1766 }
 0x364   : > { %v2276_v35 = vadd.f32 %v1049_v37, %v1035_v34  ;;  %1770 = vpow2.f32 %v985_v15 }
 0x365   : > { %v755_v36 = vpop.permute.xlu0 %754  ;;  %v2280_v41 = vpop.permute.xlu1 %1006 }
 0x366   : > { %v762_v63 = vmul.f32 %v2196_v8, %v755_v36 }
 0x36a   : > { %v803_v52 = vpop.permute.xlu0 %802  ;;  %v704_v39 = vpop.permute.xlu1 %703 }
 0x36b   : > { %v711_v37 = vmul.f32 %v2179_v59, %v704_v39  ;;  %v810_v18 = vmul.f32 %v2209_v24, %v803_v52  ;;  %v823_v52 = vsel %vm463_vm2, %v821_v58, 0.0  ;;  %v1769_v39 = vpop.eup %1768 }
 0x36d   : > { %v713_v60 = vadd.f32 %v711_v37, %v695_v55 }
 0x36f   : > { %v748_v0 = vmul.f32 %v1761_v49, %v713_v60  ;;  %v899_v3 = vpop.permute.xlu0 %898  ;;  %v851_v7 = vpop.permute.xlu1 %850 }
 0x370   : > { %v858_v8 = vmul.f32 %v2225_v44, %v851_v7  ;;  %v906_v4 = vmul.f32 %v2235_v53, %v899_v3  ;;  %v773_v3 = vmul.f32 %v2252_v10, %v2205_v19  ;;  %v869_v19 = vmul.f32 %v2254_v13, %v2237_v54 }
 0x371   : > { %v764_v9 = vadd.f32 %v762_v63, %v748_v0  ;;  %v1033_v63 = vmul.f32 1.442695, %v1030_v47  ;;  %v726_v0 = vsel %vm463_vm2, %v724_v48, 0.0  ;;  %v1771_v58 = vpop.eup %1770 }
 0x372   : > { %v775_v16 = vsel %vm463_vm2, %v773_v3, 0.0 }
 0x373   : > { %v796_v22 = vmul.f32 %v1763_v61, %v764_v9  ;;  %1772 = vpow2.f32 %v1033_v63 }
 0x374   : > { %v2289_v31 = vpop.permute.xlu0 %1042  ;;  %v947_v59 = vpop.permute.xlu1 %946 }
 0x375   : > { %v812_v11 = vadd.f32 %v810_v18, %v796_v22  ;;  %v954_v37 = vmul.f32 %v2244_v2, %v947_v59  ;;  %v967_v59 = vsel %vm463_vm2, %v965_v12, 0.0 }
 0x377   : > { %v844_v51 = vmul.f32 %v1765_v30, %v812_v11 }
 0x379   : > { %v860_v34 = vadd.f32 %v858_v8, %v844_v51  ;;  %v819_v33 = vpop.permute.xlu0 %818  ;;  %v995_v36 = vpop.permute.xlu1 %994 }
 0x37a   : > { %v822_v45 = vmul.f32 %v819_v33, %v812_v11 }
 0x37b   : > { %v892_v24 = vmul.f32 %v1767_v43, %v860_v34 }
 0x37c   : > { %v824_v44 = vsel %vm463_vm2, %v822_v45, 0.0 }
 0x37d   : > { %v825_v40 = vadd.f32 %v824_v44, %v823_v52  ;;  %v908_v62 = vadd.f32 %v906_v4, %v892_v24  ;;  %v871_v44 = vsel %vm463_vm2, %v869_v19, 0.0 }
 0x37e   : > { %v722_v55 = vpop.permute.xlu1 %721  ;;  %v963_v7 = vpop.permute.xlu0 %962 }
 0x37f   : > { %v826_v56 = vrot.slane %v825_v40, 4  ;;  %v940_v49 = vmul.f32 %v1769_v39, %v908_v62  ;;  %v725_v53 = vmul.f32 %v722_v55, %v713_v60  ;;  %v917_v39 = vmul.f32 %v2267_v25, %v2246_v29 }
 0x380   : > { %v1773_v29 = vpop.eup %1772  ;;  %v1013_v25 = vmul.f32 %v2280_v41, %v2271_v32 }
 0x381   : > { %v827_v6 = vadd.f32 %v826_v56, %v825_v40  ;;  %v956_v38 = vadd.f32 %v954_v37, %v940_v49  ;;  %v727_v28 = vsel %vm463_vm2, %v725_v53, 0.0  ;;  %v1002_v40 = vmul.f32 %v2259_v50, %v995_v36 }
 0x382   : > { %v728_v61 = vadd.f32 %v727_v28, %v726_v0  ;;  %v919_v28 = vsel %vm463_vm2, %v917_v39, 0.0 }
 0x383   : > { %v828_v57 = vrot.slane %v827_v6, 2  ;;  %v966_v2 = vmul.f32 %v963_v7, %v956_v38  ;;  %v771_v18 = vpop.permute.xlu1 %770  ;;  %v988_v47 = vmul.f32 %v1771_v58, %v956_v38 }
 0x384   : > { %v729_v60 = vrot.slane %v728_v61, 4  ;;  %v774_v22 = vmul.f32 %v771_v18, %v764_v9 }
 0x385   : > { %v829_v11 = vadd.f32 %v828_v57, %v827_v6  ;;  %v968_v14 = vsel %vm463_vm2, %v966_v2, 0.0  ;;  %v1004_v53 = vadd.f32 %v1002_v40, %v988_v47 }
 0x386   : > { %v969_v30 = vadd.f32 %v968_v14, %v967_v59  ;;  %v730_v15 = vadd.f32 %v729_v60, %v728_v61  ;;  %v776_v51 = vsel %vm463_vm2, %v774_v22, 0.0  ;;  %v1050_v14 = vmul.f32 %v2212_v27, %v2289_v31 }
 0x387   : > { %v830_v10 = vrot.slane %v829_v11, 1  ;;  %v777_v8 = vadd.f32 %v776_v51, %v775_v16  ;;  %v1036_v60 = vmul.f32 %v1773_v29, %v1004_v53 }
 0x388   : > { %v970_v33 = vrot.slane %v969_v30, 4  ;;  %v731_v9 = vrot.slane %v730_v15, 2  ;;  %v867_v43 = vpop.permute.xlu1 %866 }
 0x389   : > { %v831_v45 = vadd.f32 %v830_v10, %v829_v11  ;;  %v778_v4 = vrot.slane %v777_v8, 4  ;;  %v870_v24 = vmul.f32 %v867_v43, %v860_v34  ;;  %v1052_v10 = vadd.f32 %v1050_v14, %v1036_v60  ;;  %v2364_v60 = vld [vmem:[%s2493_s9] sm:$0x1f] }
 0x38a   : > { %v971_v48 = vadd.f32 %v970_v33, %v969_v30  ;;  %v732_v52 = vadd.f32 %v731_v9, %v730_v15  ;;  %v1015_v30 = vsel %vm463_vm2, %v1013_v25, 0.0  ;;  %v1201_v25 = vld [vmem:[%s2490_s6 + $0x18] sm:$0xff] }
 0x38b   : > { %832 = vst.msk [vmem:[#allocation3 + $0x2] sm:$0x1] %vm735_vm4, %v831_v45  ;;  %v779_v54 = vadd.f32 %v778_v4, %v777_v8  ;;  %v872_v13 = vsel %vm463_vm2, %v870_v24, 0.0 }
 0x38c   : > { %v972_v55 = vrot.slane %v971_v48, 2  ;;  %v733_v37 = vrot.slane %v732_v52, 1  ;;  %v873_v56 = vadd.f32 %v872_v13, %v871_v44 }
 0x38d   : > { %v780_v49 = vrot.slane %v779_v54, 2  ;;  %v915_v34 = vpop.permute.xlu1 %914 }
 0x38e   : > { %v973_v63 = vadd.f32 %v972_v55, %v971_v48  ;;  %v734_v0 = vadd.f32 %v733_v37, %v732_v52  ;;  %v874_v12 = vrot.slane %v873_v56, 4  ;;  %v918_v6 = vmul.f32 %v915_v34, %v908_v62  ;;  %v1055_v62 = vpop.permute.xlu0 %1054 }
 0x38f   : > { %v781_v38 = vadd.f32 %v780_v49, %v779_v54  ;;  %v1061_v15 = vmul.f32 %v1055_v62, %v2276_v35  ;;  %v1077_v49 = vrot.slane %v2051_v21, %v2055_v23  ;;  %v1191_v62 = vrot.slane %v2364_v60, %v2040_v17  ;;  %v1304_v17 = vld [vmem:[%s2491_s7 + $0x68] sm:$0xff] }
 0x390   : > { %v974_v50 = vrot.slane %v973_v63, 1  ;;  %736 = vst.msk [vmem:[#allocation3] sm:$0x1] %vm735_vm4, %v734_v0  ;;  %v875_v36 = vadd.f32 %v874_v12, %v873_v56  ;;  %v920_v3 = vsel %vm463_vm2, %v918_v6, 0.0 }
 0x391   : > { %v782_v7 = vrot.slane %v781_v38, 1  ;;  %v921_v61 = vadd.f32 %v920_v3, %v919_v28  ;;  %v1063_v43 = vsel %vm463_vm2, %v1061_v15, 0.0  ;;  %v1078_v34 = vmul.f32 %v1077_v49, %v2065_v46  ;;  %v1301_v15 = vld [vmem:[%s2491_s7 + $0x50] sm:$0xff] }
 0x392   : > { %v975_v57 = vadd.f32 %v974_v50, %v973_v63  ;;  %v876_v2 = vrot.slane %v875_v36, 2  ;;  %v1011_v18 = vpop.permute.xlu1 %1010 }
 0x393   : > { %v783_v22 = vadd.f32 %v782_v7, %v781_v38  ;;  %v922_v59 = vrot.slane %v921_v61, 4  ;;  %v1014_v11 = vmul.f32 %v1011_v18, %v1004_v53  ;;  %v1200_v7 = vld [vmem:[%s2490_s6 + $0x10] sm:$0xff] }
 0x394   : > { %976 = vst.msk [vmem:[#allocation3 + $0x5] sm:$0x1] %vm735_vm4, %v975_v57  ;;  %v877_v16 = vadd.f32 %v876_v2, %v875_v36 }
 0x395   : > { %784 = vst.msk [vmem:[#allocation3 + $0x1] sm:$0x1] %vm735_vm4, %v783_v22  ;;  %v923_v32 = vadd.f32 %v922_v59, %v921_v61  ;;  %v1016_v41 = vsel %vm463_vm2, %v1014_v11, 0.0  ;;  %v1198_v61 = vld [vmem:[%s2490_s6] sm:$0xff]  ;;  %v1196_v11 = vrot.slane %v2364_v60, %v2046_v20 }
 0x396   : > { %v878_v51 = vrot.slane %v877_v16, 1  ;;  %v1017_v19 = vadd.f32 %v1016_v41, %v1015_v30  ;;  %v1306_v30 = vld [vmem:[%s2491_s7 + $0x78] sm:$0xff]  ;;  %v1303_v20 = vld [vmem:[%s2491_s7 + $0x60] sm:$0xff] }
 0x397   : > { %v924_v8 = vrot.slane %v923_v32, 2  ;;  %v1059_v58 = vpop.permute.xlu1 %1058  ;;  %1609 = vmatpush3.msra.mxu0 %v1306_v30  ;;  %v1302_v41 = vld [vmem:[%s2491_s7 + $0x58] sm:$0xff] }
 0x398   : > { %v879_v33 = vadd.f32 %v878_v51, %v877_v16  ;;  %v1018_v9 = vrot.slane %v1017_v19, 4  ;;  %v1062_v27 = vmul.f32 %v1059_v58, %v1052_v10  ;;  %1610 = vmatprep.subr.mxu0 %v1844_v1  ;;  %v1300_v51 = vld [vmem:[%s2491_s7 + $0x48] sm:$0xff]  ;;  %v1298_v10 = vld [vmem:[%s2491_s7 + $0x38] sm:$0xff] }
 0x399   : > { %v925_v31 = vadd.f32 %v924_v8, %v923_v32  ;;  %v1305_v32 = vld [vmem:[%s2491_s7 + $0x70] sm:$0xff]  ;;  %v1296_v58 = vld [vmem:[%s2491_s7 + $0x28] sm:$0xff] }
 0x39a   : > { %880 = vst.msk [vmem:[#allocation3 + $0x3] sm:$0x1] %vm735_vm4, %v879_v33  ;;  %v1019_v45 = vadd.f32 %v1018_v9, %v1017_v19  ;;  %v1064_v4 = vsel %vm463_vm2, %v1062_v27, 0.0  ;;  %1611 = vmatpush3.msra.mxu0 %v1305_v32  ;;  %v1299_v19 = vld [vmem:[%s2491_s7 + $0x40] sm:$0xff]  ;;  %v1297_v8 = vld [vmem:[%s2491_s7 + $0x30] sm:$0xff]  ;;  %v1294_v9 = vld [vmem:[%s2491_s7 + $0x18] sm:$0xff] }
 0x39b   : > { %v926_v24 = vrot.slane %v925_v31, 1  ;;  %v1065_v47 = vadd.f32 %v1064_v4, %v1063_v43  ;;  %v1089_v0 = vpop.permute.xlu1 %1088  ;;  %1612 = vmatprep.subr.mxu0 %v1844_v1  ;;  %v1295_v33 = vld [vmem:[%s2491_s7 + $0x20] sm:$0xff]  ;;  %v1293_v27 = vld [vmem:[%s2491_s7 + $0x10] sm:$0xff] }
 0x39c   : > { %v1020_v48 = vrot.slane %v1019_v45, 2  ;;  %1613 = vmatpush3.msra.mxu0 %v1304_v17  ;;  %v1291_v43 = vld [vmem:[%s2491_s7] sm:$0xff] }
 0x39d   : > { %v927_v35 = vadd.f32 %v926_v24, %v925_v31  ;;  %v1066_v52 = vrot.slane %v1065_v47, 4  ;;  %1614 = vmatprep.subr.mxu0 %v1844_v1  ;;  %v1292_v31 = vld [vmem:[%s2491_s7 + $0x8] sm:$0xff] }
 0x39e   : > { %v1021_v44 = vadd.f32 %v1020_v48, %v1019_v45  ;;  %1615 = vmatpush3.msra.mxu0 %v1303_v20  ;;  %v1497_v45 = vld [vmem:[%s2492_s8] ss:$0 sm:$0xff] }
 0x39f   : > { %928 = vst.msk [vmem:[#allocation3 + $0x4] sm:$0x1] %vm735_vm4, %v927_v35  ;;  %v1067_v40 = vadd.f32 %v1066_v52, %v1065_v47  ;;  %1616 = vmatprep.subr.mxu0 %v1844_v1 }
 0x3a0   : > { %v1022_v54 = vrot.slane %v1021_v44, 1  ;;  %1617 = vmatpush3.msra.mxu0 %v1302_v41 }
 0x3a1   : > { %v1068_v13 = vrot.slane %v1067_v40, 2  ;;  %1618 = vmatprep.subr.mxu0 %v1844_v1 }
 0x3a2   : > { %v1023_v39 = vadd.f32 %v1022_v54, %v1021_v44  ;;  %1619 = vmatpush3.msra.mxu0 %v1301_v15 }
 0x3a3   : > { %v1069_v55 = vadd.f32 %v1068_v13, %v1067_v40  ;;  %1620 = vmatprep.subr.mxu0 %v1844_v1 }
 0x3a4   : > { %1024 = vst.msk [vmem:[#allocation3 + $0x6] sm:$0x1] %vm735_vm4, %v1023_v39  ;;  %1621 = vmatpush3.msra.mxu0 %v1300_v51 }
 0x3a5   : > { %v1070_v37 = vrot.slane %v1069_v55, 1  ;;  %1622 = vmatprep.subr.mxu0 %v1844_v1 }
 0x3a6   : > { %1623 = vmatpush3.msra.mxu0 %v1299_v19 }
 0x3a7   : > { %v1071_v56 = vadd.f32 %v1070_v37, %v1069_v55  ;;  %1624 = vmatprep.subr.mxu0 %v1844_v1 }
 0x3a8   : > { %1625 = vmatpush3.msra.mxu0 %v1298_v10 }
 0x3a9   : > { %1072 = vst.msk [vmem:[#allocation3 + $0x7] sm:$0x1] %vm735_vm4, %v1071_v56  ;;  %1626 = vmatprep.subr.mxu0 %v1844_v1 }
 0x3aa   : > { %1627 = vmatpush3.msra.mxu0 %v1297_v8 }
 0x3ab   : > { %1628 = vmatprep.subr.mxu0 %v1844_v1 }
 0x3ac   : > { %1629 = vmatpush3.msra.mxu0 %v1296_v58 }
 0x3ad   : > { %1630 = vmatprep.subr.mxu0 %v1844_v1 }
 0x3ae   : > { %1631 = vmatpush3.msra.mxu0 %v1295_v33 }
 0x3af   : > { %1632 = vmatprep.subr.mxu0 %v1844_v1 }
 0x3b0   : > { %v1073_v53 = vld [vmem:[#allocation3] sm:$0xff]  ;;  %1633 = vmatpush3.msra.mxu0 %v1294_v9 }
 0x3b1   : > { %v1079_v63 = vadd.f32 %v1078_v34, %v1073_v53  ;;  %1634 = vmatprep.subr.mxu0 %v1844_v1 }
 0x3b2   : > { %1635 = vmatpush3.msra.mxu0 %v1293_v27 }
 0x3b3   : > { %v1091_v12 = vmul.f32 %v1089_v0, %v1079_v63  ;;  %1636 = vmatprep.subr.mxu0 %v1844_v1 }
 0x3b4   : > { %1637 = vmatpush3.msra.mxu0 %v1292_v31 }
 0x3b5   : > { %1595 = vmatmul.mubr.msk.f32.vlgmr.msra.gmra.mxu1 %vm463_vm2, %v1091_v12  ;;  %1638 = vmatprep.subr.mxu0 %v1844_v1 }
 0x3b6   : > { %1605 = vmatprep.mubr.msk.f32.mxu1 %vm1845_vm0, %v1844_v1  ;;  %1598 = vmatpush3.msra.mxu1 %v1201_v25 }
 0x3b7   : > { %1599 = vmatprep.subr.mxu1 %v1844_v1  ;;  %1639 = vmatpush3.msra.mxu0 %v1291_v43 }
 0x3b8   : > { %1600 = vmatpush3.msra.mxu1 %v1200_v7 }
 0x3b9   : > { %1601 = vmatprep.subr.mxu1 %v1844_v1 }
 0x475   : > { %v1169_v6 = vpop.f32.mrf.mxu1 }
 0x476   : > { %v1173_v38 = vadd.f32 %v1169_v6, %v1990_v5  ;;  %v1199_v5 = vld [vmem:[%s2490_s6 + $0x8] sm:$0xff] }
 0x477   : > { %v1596_v28 = vpop.f32.mrf.mxu1  ;;  %1602 = vmatpush3.msra.mxu1 %v1199_v5 }
 0x478   : > { %v1174_v50 = vsel %vm389_vm1, %v1173_v38, 0.0  ;;  %1603 = vmatprep.subr.mxu1 %v1844_v1  ;;  %v1310_v1 = vrot.slane %v2364_v60, %v2140_v42 }
 0x479   : > { %1175 = vadd.xlane.f32.xlu0 %v1174_v50  ;;  %1604 = vmatpush3.msra.mxu1 %v1198_v61 }
 0x502   : > { %v1176_v36 = vpop.xlane.xlu0 %1175 }
 0x503   : > { %v1178_v21 = vmul.f32 0.03125, %v1176_v36 }
 0x505   : > { %v1179_v3 = vsub.f32 %v1173_v38, %v1178_v21 }
 0x507   : > { %v1180_v46 = vmul.f32 %v1179_v3, %v1179_v3 }
 0x509   : > { %v1181_v29 = vsel %vm389_vm1, %v1180_v46, 0.0 }
 0x50a   : > { %1182 = vadd.xlane.f32.xlu1 %v1181_v29 }
 0x593   : > { %v1183_v57 = vpop.xlane.xlu1 %1182 }
 0x594   : > { %v1184_v2 = vmul.f32 0.03125, %v1183_v57  ;;  %v1407_v57 = vrot.slane %v2364_v60, %v2055_v23 }
 0x596   : > { %v1185_v18 = vadd.f32 1e-05, %v1184_v2 }
 0x598   : > { %1774 = vrsqrt.f32 %v1185_v18 }
 0x5a5   : > { %v1775_v22 = vpop.eup %1774 }
 0x5a6   : > { %v1187_v59 = vmul.f32 %v1775_v22, %v1179_v3 }
 0x5a8   : > { %v1192_v14 = vmul.f32 %v1191_v62, %v1187_v59  ;;  %v1412_v62 = vrot.slane %v2364_v60, %v2061_v26 }
 0x5aa   : > { %v2370_v16 = vadd.f32 %v1196_v11, %v1192_v14 }
 0x5ac   : > { %1606 = vmatmul.mubr.msk.f32.vlgmr.msra.gmra.mxu1 %vm389_vm1, %v2370_v16 }
 0x66c   : > { %v1278_v4 = vpop.f32.mrf.mxu1 }
 0x66d   : > { %v1279_v24 = vadd.f32 %v1497_v45, %v1278_v4 }
 0x66e   : > { %v1607_v47 = vpop.f32.mrf.mxu1 }
 0x66f   : > { %v1283_v48 = vmul.f32 0.044715, %v1279_v24  ;;  %v1282_v13 = vmul.f32 0.5, %v1279_v24 }
 0x671   : > { %v1284_v35 = vmul.f32 %v1283_v48, %v1279_v24 }
 0x673   : > { %v1285_v52 = vmul.f32 %v1284_v35, %v1279_v24 }
 0x675   : > { %v1286_v44 = vadd.f32 %v1285_v52, %v1279_v24 }
 0x677   : > { %v1287_v40 = vmul.f32 0.7978846, %v1286_v44 }
 0x679   : > { %1776 = vtanh.f32 %v1287_v40 }
 0x686   : > { %v1777_v54 = vpop.eup %1776 }
 0x687   : > { %v1289_v39 = vadd.f32 1.0, %v1777_v54 }
 0x689   : > { %v1290_v55 = vmul.f32 %v1289_v39, %v1282_v13 }
 0x68b   : > { %1641 = vmatmul.mubr.f32.vlgmr.msra.gmra.mxu0 %v1290_v55 }
 0x74b   : > { %v1377_v37 = vpop.f32.mrf.mxu0 }
 0x74c   : > { %v1378_v56 = vadd.f32 %v1377_v37, %v1310_v1 }
 0x74d   : > { %v1642_v49 = vpop.f32.mrf.mxu0 }
 0x74e   : > { %v1382_v34 = vmul.f32 0.044715, %v1378_v56  ;;  %v1381_v38 = vmul.f32 0.5, %v1378_v56 }
 0x750   : > { %v1383_v53 = vmul.f32 %v1382_v34, %v1378_v56 }
 0x752   : > { %v1384_v63 = vmul.f32 %v1383_v53, %v1378_v56 }
 0x754   : > { %v1385_v0 = vadd.f32 %v1384_v63, %v1378_v56 }
 0x756   : > { %v1386_v12 = vmul.f32 0.7978846, %v1385_v0 }
 0x758   : > { %1778 = vtanh.f32 %v1386_v12 }
 0x765   : > { %v1779_v6 = vpop.eup %1778 }
 0x766   : > { %v1388_v28 = vadd.f32 1.0, %v1779_v6 }
 0x768   : > { %v1389_v50 = vmul.f32 %v1388_v28, %v1381_v38 }
 0x76a   : > { %v1390_v36 = vadd.f32 %v1389_v50, %v2370_v16 }
 0x76c   : > { %v1391_v21 = vsel %vm389_vm1, %v1390_v36, 0.0 }
 0x76d   : > { %1392 = vadd.xlane.f32.xlu0 %v1391_v21 }
 0x7f6   : > { %v1393_v42 = vpop.xlane.xlu0 %1392 }
 0x7f7   : > { %v1394_v3 = vmul.f32 0.03125, %v1393_v42 }
 0x7f9   : > { %v1395_v46 = vsub.f32 %v1390_v36, %v1394_v3 }
 0x7fb   : > { %v1396_v29 = vmul.f32 %v1395_v46, %v1395_v46 }
 0x7fd   : > { %v1397_v25 = vsel %vm389_vm1, %v1396_v29, 0.0 }
 0x7fe   : > { %1398 = vadd.xlane.f32.xlu0 %v1397_v25 }
 0x887   : > { %v1399_v7 = vpop.xlane.xlu0 %1398 }
 0x888   : > { %v1400_v5 = vmul.f32 0.03125, %v1399_v7 }
 0x88a   : > { %v1401_v61 = vadd.f32 1e-05, %v1400_v5 }
 0x88c   : > { %1780 = vrsqrt.f32 %v1401_v61 }
 0x899   : > { %v1781_v2 = vpop.eup %1780 }
 0x89a   : > { %v1403_v18 = vmul.f32 %v1781_v2, %v1395_v46 }
 0x89c   : > { %v1408_v22 = vmul.f32 %v1407_v57, %v1403_v18 }
 0x89e   : > { %v1413_v59 = vadd.f32 %v1412_v62, %v1408_v22 }
 0x8a0   : > { %1414 = vst.msk [vmem:[%s377_s12] sm:$0xff] %vm389_vm1, %v1413_v59 }
 0x8a1   : > { %1795 = shalt.err (!%p1792_p3)
}
 0x8a2   : > { %s1796_s29 = scalar_lea.hbm %s1427_s16, 128  ;;  %s1800_s12 = scalar_lea.hbm %s2495_s11, 256 }
 0x8a3   : > { %p1797_p4 = scmp.ne.s32.totalorder %s1427_s16, %s1796_s29  ;;  %p1801_p9 = scmp.lt.s32.totalorder %s1427_s16, %s2495_s11 }
 0x8a4   : > { %p1802_p10 = scmp.lt.s32.totalorder %s1800_s12, %s1796_s29 }
 0x8a5   : > { %p1798_p7 = pnand %p1797_p4, %p1955_p5 }
 0x8a6   : > { %p1803_p11 = por %p1802_p10, %p1801_p9 }
 0x8a7   : > { %p1799_p8 = pneg %p1798_p7 }
 0x8a9   : > { %p1804_p12 = pnand %p1803_p11, %p1799_p8 }
 0x8ab   : > { %1807 = shalt.err (!%p1804_p12)
}
 0x8ac   : > { %1643 = dma.vmem_to_hbm [thread:$0]  (%p1955_p5), %s1430_s13, 128, %s1427_s16, %s1416_s22  }
 0x8ad PF: > { %p1649_p13 = scmp.ge.s32.totalorder %s1842_s20, 2  ;;  %s1441_s0 = sand.u32 1, %s1830_s17  }
 0x8ae   : > { %s1442_s1 = scalar_lea.sflag [#allocation5], %s1441_s0 }
 0x8af   : > { %p1646_p0 = pnand %p1649_p13, %p1959_p6 }
 0x8b1   : > { %p1647_p1 = pneg %p1646_p0 }
 0x8b3   : > { %1825 = dma.done.wait (%p1647_p1), %s1442_s1, 128  }
 0x8b4   : > { %1827 = vsyncadd (%p1647_p1), %s1442_s1, 4294967168  ;;  %p21_p2 = scmp.ge.s32.totalorder %s1942_s23, 4   ;;  %s2502_s17 = smov %s1834_s18 }
 0x8b5   : > { %s2503_s18 = smov %s1838_s19  ;;  %s2504_s19 = smov %s1953_s26 }
 0x8b6   : > { %s2505_s20 = smov %s1942_s23  ;;  %23 = sbr.rel (!%p21_p2) target bundleno = 6 (0x6), region = 99 }
 0x8bb   :  { %1447 = vsyncpa [#allocation5], 1 }
 0x8bc   :  { %1449 = vsyncpa [#allocation5 + $0x1], 1 }

</bundles_post_ra>
